<compile_context>
chip_gen: v7x
topology: tpu7x:2x2x1
jax: 0.10.0
libtpu: 0.0.40
codegen_flags: <defaults>
</compile_context>

<pallas_src>
import jax
import jax.numpy as jnp
from jax import lax
from jax.experimental import pallas as pl
from jax.experimental.pallas import tpu as pltpu


# ---------------------------------------------------------------------------
# Glue helpers
# ---------------------------------------------------------------------------
def _fold_att(w, att):
    """Fold (w, att) -> v with v[:, h] = w[:, h*C:(h+1)*C] @ att[h] (exact math)."""
    d = w.shape[0]
    h, c = att.shape
    return jnp.einsum("dhc,hc->dh", w.reshape(d, h, c), att)


def _dense_adjacency(edges, n_dst, n_src):
    """adj[d, s] = 1 iff edge s->d; self loops forced for i < min(n_dst, n_src)
    (PyG GATConv add_self_loops=True behaviour, also for the bipartite case)."""
    adj = jnp.zeros((n_dst, n_src), jnp.float32)
    adj = adj.at[edges[1], edges[0]].set(1.0)
    d = min(n_dst, n_src)
    idx = jnp.arange(d)
    adj = adj.at[idx, idx].set(1.0)
    # TODO(synk): duplicate edges are de-duplicated by the dense mask; PyG's
    # segment softmax would count each duplicate edge separately.
    return adj.astype(jnp.bfloat16)   # 0/1 exact in bf16, halves the mask DMA


def _elu(x):
    # TODO(synk): uses exp(x)-1 (not expm1); matches the reference to fp tolerance.
    return jnp.where(x > 0, x, jnp.exp(x) - 1.0)


# ---------------------------------------------------------------------------
# In-kernel helpers
# ---------------------------------------------------------------------------
def _matmul_nt(a, b):
    """a @ b.T (rhs contraction on its last dim -> MXU trans_b), f32 accumulate."""
    return lax.dot_general(a, b, (((1,), (1,)), ((), ())),
                           preferred_element_type=jnp.float32)


def _gat_block(a_srcT, a_dst, x_src, mask, n_heads, c):
    """All heads of one GAT: masked per-destination softmax over sources +
    lane-dense aggregation.
      a_srcT: (H, N_src) f32, a_dst: (T, H) f32,
      x_src : (N_src, H*C) f32 (all heads concatenated on lanes),
      mask  : (T, N_src) bool adjacency.
    Each head multiplies its (T, N_src) attention by a lane-masked copy of
    x_src, so every MXU output is the full 128-lane (T, H*C) slab (no 32-lane
    outputs / masked lane-offset stores); the zero blocks contribute exact 0."""
    n_src, hc = x_src.shape
    col = lax.broadcasted_iota(jnp.int32, (n_src, hc), 1)
    out = None
    for h in range(n_heads):
        e = a_dst[:, h:h + 1] + a_srcT[h:h + 1, :]            # (T, N_src)
        e = jnp.where(e > 0, e, 0.2 * e)                      # LeakyReLU(0.2)
        e = jnp.where(mask, e, -1e30)
        e = e - jnp.max(e, axis=-1, keepdims=True)
        p = jnp.where(mask, jnp.exp(e), 0.0)                  # keeps isolated rows -> 0
        denom = jnp.sum(p, axis=-1, keepdims=True)
        attn = p * pl.reciprocal(denom + 1e-16, approx=True)  # divide on the EUP slot
        xh = jnp.where((col >= h * c) & (col < (h + 1) * c), x_src, 0.0)
        contrib = jnp.dot(attn.astype(jnp.bfloat16), xh.astype(jnp.bfloat16),
                          preferred_element_type=jnp.float32)  # (T, H*C) lane-dense
        out = contrib if out is None else out + contrib
    return out


# ---------------------------------------------------------------------------
# Fused SectionNet kernel (one destination-row tile per grid step)
# ---------------------------------------------------------------------------
def _sectionnet_kernel(
    hS_t_ref, hS_f_ref, hs_ref, adj_s_ref, adj_S_ref,
    w_src_s_ref, vsrcT_s_ref, w_S_ref, vsrcT_S_ref, w_alpha_ref,
    bias_s_ref, bias_S_ref, wf_ref, bf_ref, w1_ref, b1_ref, w2_ref, b2_ref,
    o_ref,
):
    f32, bf16 = jnp.float32, jnp.bfloat16
    n_heads = vsrcT_s_ref.shape[0]
    hc = w_src_s_ref.shape[1]
    c = hc // n_heads

    hS_t = hS_t_ref[...]                          # (T, d_sec) f32: dst tile + residual
    hS_t_bf = hS_t.astype(bf16)
    hS_f_bf = hS_f_ref[...].astype(bf16)          # (N_S, d_sec) full source set
    hs_bf = hs_ref[...].astype(bf16)              # (N_s, d_sen)
    mask_s = adj_s_ref[...] > 0                   # bf16 masks compared directly (no f32 copy)
    mask_S = adj_S_ref[...] > 0

    # ---- source-side projections (bf16 operands, f32 accumulate) ------------
    xs = jnp.dot(hs_bf, w_src_s_ref[...], preferred_element_type=f32)     # (N_s, H*C)
    xS = jnp.dot(hS_f_bf, w_S_ref[...], preferred_element_type=f32)       # (N_S, H*C)
    a_srcT_s = _matmul_nt(vsrcT_s_ref[...], hs_bf)                        # (H, N_s)
    a_srcT_S = _matmul_nt(vsrcT_S_ref[...], hS_f_bf)                      # (H, N_S)

    # ---- dst-side alpha projections, merged into one tiny matmul ------------
    a_dst = jnp.dot(hS_t_bf, w_alpha_ref[...], preferred_element_type=f32)  # (T, 2H)
    a_dst_S = a_dst[:, :n_heads]
    a_dst_s = a_dst[:, n_heads:]

    # ---- gat_s (sentences -> sections) and gat_S (sections -> sections) -----
    u_s = _elu(_gat_block(a_srcT_s, a_dst_s, xs, mask_s, n_heads, c) + bias_s_ref[...])
    u_S = _elu(_gat_block(a_srcT_S, a_dst_S, xS, mask_S, n_heads, c) + bias_S_ref[...])

    # ---- Fusion: one K=2*HC matmul on the lane-aligned concat ----------------
    cat = jnp.concatenate([u_S, u_s], axis=-1).astype(bf16)               # (T, 2*H*C)
    zl = jnp.dot(cat, wf_ref[...], preferred_element_type=f32) + bf_ref[...]
    # Exact divide here: approx reciprocal on the sigmoid was flagged as a
    # tolerance risk (review correctness concern #1).
    z = 1.0 / (1.0 + jnp.exp(-zl))
    u = z * u_S + (1.0 - z) * u_s
    # TODO(synk): F.dropout(p=0.1) after the fusion and inside FFN omitted (inference).

    # ---- FFN + residual ------------------------------------------------------
    h1 = jnp.dot(u.astype(bf16), w1_ref[...], preferred_element_type=f32) + b1_ref[...]
    o_ref[...] = (jnp.dot(h1.astype(bf16), w2_ref[...], preferred_element_type=f32)
                  + b2_ref[...] + hS_t)


# ---------------------------------------------------------------------------
# Wrapper
# ---------------------------------------------------------------------------
def sectionnet_forward(HS, Hs, s2S, S2S, params, tile_ns=8):
    n_sec, d_sec = HS.shape
    n_sen, _ = Hs.shape
    h, c = params["att_src_s"].shape
    bf16 = jnp.bfloat16

    # Pad the destination/section axis up to the tile size (padded rows are
    # fully masked -> attention 0 -> sliced off at the end).
    n_pad = ((n_sec + tile_ns - 1) // tile_ns) * tile_ns
    pad = n_pad - n_sec

    adj_s = _dense_adjacency(s2S, n_sec, n_sen)          # (N_S, N_s) bf16
    adj_S = _dense_adjacency(S2S, n_sec, n_sec)          # (N_S, N_S) bf16
    HS_p = HS
    if pad:
        HS_p = jnp.pad(HS, ((0, pad), (0, 0)))
        adj_s = jnp.pad(adj_s, ((0, pad), (0, 0)))
        adj_S = jnp.pad(adj_S, ((0, pad), (0, pad)))

    # Param-only folds (replace the unused dst projection & block-diag attm);
    # the two 4-lane dst-alpha projections are merged into one (d_sec, 2H) slab.
    vdst_S = _fold_att(params["w_S"], params["att_dst_S"])            # (d_sec, H)
    vdst_s = _fold_att(params["w_dst_s"], params["att_dst_s"])        # (d_sec, H)
    w_alpha = jnp.concatenate([vdst_S, vdst_s], axis=1).astype(bf16)  # (d_sec, 2H)
    vsrcT_s = _fold_att(params["w_src_s"], params["att_src_s"]).T.astype(bf16)  # (H, d_sen)
    vsrcT_S = _fold_att(params["w_S"], params["att_src_S"]).T.astype(bf16)      # (H, d_sec)

    args = (HS_p, HS_p, Hs, adj_s, adj_S,
            params["w_src_s"].astype(bf16), vsrcT_s,
            params["w_S"].astype(bf16), vsrcT_S, w_alpha,
            params["bias_s"], params["bias_S"],
            params["wf"].astype(bf16), params["bf"],
            params["w1"].astype(bf16), params["b1"],
            params["w2"].astype(bf16), params["b2"])

    def tiled(shape):
        return pl.BlockSpec((tile_ns, shape[1]), lambda i: (i, 0))

    def full(shape):
        return pl.BlockSpec(shape, lambda i, _nd=len(shape): (0,) * _nd)

    in_specs = ([tiled(HS_p.shape), full(HS_p.shape), full(Hs.shape),
                 tiled(adj_s.shape), tiled(adj_S.shape)]
                + [full(a.shape) for a in args[5:]])

    out = pl.pallas_call(
        _sectionnet_kernel,
        out_shape=jax.ShapeDtypeStruct((n_pad, d_sec), jnp.float32),
        grid=(n_pad // tile_ns,),
        in_specs=in_specs,
        out_specs=pl.BlockSpec((tile_ns, d_sec), lambda i: (i, 0)),
        compiler_params=pltpu.CompilerParams(
            dimension_semantics=("parallel",),          # megacore / pipelining
            vmem_limit_bytes=48 * 1024 * 1024),         # leaves headroom on v7x (64 MiB)
    )(*args)
    return out[:n_sec]


# ---------------------------------------------------------------------------
# Mixed-precision reference (same bf16-operand / f32-accumulate matmul policy,
# textbook GAT / Fusion / FFN structure; exact softmax divide).
# ---------------------------------------------------------------------------
def _mm(a, b):
    return jnp.dot(a.astype(jnp.bfloat16), b.astype(jnp.bfloat16),
                   preferred_element_type=jnp.float32)


def _gat_dense_reference(x_src, x_dst, w_src, w_dst, att_src, att_dst, bias, adj):
    h, c = att_src.shape
    n_src, n_dst = x_src.shape[0], x_dst.shape[0]
    xs = _mm(x_src, w_src).reshape(n_src, h, c)
    # alpha via the mathematically exact fold  x @ (W_h @ att_h)
    a_src = _mm(x_src, _fold_att(w_src, att_src))         # (N_src, H)
    a_dst = _mm(x_dst, _fold_att(w_dst, att_dst))         # (N_dst, H)
    e = a_dst[:, None, :] + a_src[None, :, :]             # (N_dst, N_src, H)
    e = jnp.where(e > 0, e, 0.2 * e)
    m = (adj > 0)[:, :, None]
    e = jnp.where(m, e, -1e30)
    e = e - jnp.max(e, axis=1, keepdims=True)
    p = jnp.where(m, jnp.exp(e), 0.0)
    attn = p / (jnp.sum(p, axis=1, keepdims=True) + 1e-16)
    out = jnp.einsum("dsh,shc->dhc",
                     attn.astype(jnp.bfloat16), xs.astype(jnp.bfloat16),
                     preferred_element_type=jnp.float32).reshape(n_dst, h * c)
    return out + bias


def sectionnet_reference(HS, Hs, s2S, S2S, params):
    n_sec = HS.shape[0]
    n_sen = Hs.shape[0]
    adj_s = _dense_adjacency(s2S, n_sec, n_sen)
    adj_S = _dense_adjacency(S2S, n_sec, n_sec)
    Us = _elu(_gat_dense_reference(Hs, HS, params["w_src_s"], params["w_dst_s"],
                                   params["att_src_s"], params["att_dst_s"],
                                   params["bias_s"], adj_s))
    US = _elu(_gat_dense_reference(HS, HS, params["w_S"], params["w_S"],
                                   params["att_src_S"], params["att_dst_S"],
                                   params["bias_S"], adj_S))
    zl = _mm(jnp.concatenate([US, Us], -1), params["wf"]) + params["bf"]
    z = 1.0 / (1.0 + jnp.exp(-zl))
    u = z * US + (1.0 - z) * Us
    h1 = _mm(u, params["w1"]) + params["b1"]
    return _mm(h1, params["w2"]) + params["b2"] + HS


# ---------------------------------------------------------------------------
if __name__ == "__main__":
    sentence_size, section_size, n_heads = 64, 32, 4     # H*C = 128 (lane dense)
    ffn_hidden = 256                                     # module default 2048; small demo
    n_sections, n_sentences = 16, 24
    e_s2S, e_S2S = 48, 40

    key = jax.random.PRNGKey(0)
    ks = jax.random.split(key, 24)
    HS = jax.random.normal(ks[0], (n_sections, section_size), jnp.float32)
    Hs = jax.random.normal(ks[1], (n_sentences, sentence_size), jnp.float32)
    s2S = jnp.stack([jax.random.randint(ks[2], (e_s2S,), 0, n_sentences),
                     jax.random.randint(ks[3], (e_s2S,), 0, n_sections)]).astype(jnp.int32)
    S2S = jnp.stack([jax.random.randint(ks[4], (e_S2S,), 0, n_sections),
                     jax.random.randint(ks[5], (e_S2S,), 0, n_sections)]).astype(jnp.int32)

    def init(k, shape, scale=0.1):
        return scale * jax.random.normal(k, shape, jnp.float32)

    hc = n_heads * section_size
    params = {
        "w_src_s": init(ks[6], (sentence_size, hc)),     # gat_s lin_src (no bias)
        "w_dst_s": init(ks[7], (section_size, hc)),      # gat_s lin_dst (alpha only)
        "att_src_s": init(ks[8], (n_heads, section_size)),
        "att_dst_s": init(ks[9], (n_heads, section_size)),
        "bias_s": init(ks[10], (1, hc)),                 # gat_s bias (concat=True)
        "w_S": init(ks[11], (section_size, hc)),         # gat_S shared lin
        "att_src_S": init(ks[12], (n_heads, section_size)),
        "att_dst_S": init(ks[13], (n_heads, section_size)),
        "bias_S": init(ks[14], (1, hc)),
        "wf": init(ks[15], (2 * hc, hc)),                # Fusion.linear
        "bf": init(ks[16], (1, hc)),
        "w1": init(ks[17], (hc, ffn_hidden)),            # FFN.l1
        "b1": init(ks[18], (1, ffn_hidden)),
        "w2": init(ks[19], (ffn_hidden, section_size)),  # FFN.l2
        "b2": jnp.zeros((1, section_size), jnp.float32),
    }

    out = jax.jit(sectionnet_forward)(HS, Hs, s2S, S2S, params)
    out = jax.block_until_ready(out)

    ref = sectionnet_reference(HS, Hs, s2S, S2S, params)
    assert out.shape == (n_sections, section_size)
    assert bool(jnp.all(jnp.isfinite(out)))
    # Tolerance covers the kernel's EUP approximate reciprocal in the softmax
    # and MXU accumulation-order differences vs the XLA mixed-precision
    # reference (both use bf16 MXU operands with f32 accumulation).
    max_err = float(jnp.max(jnp.abs(out - ref)))
    assert jnp.allclose(out, ref, atol=2e-2, rtol=2e-2), max_err
    print("KERNEL_OK")
</pallas_src>

<mosaic_0001>
module attributes {stable_mosaic.version = 11 : i64} {
  func.func @_sectionnet_kernel(%arg0: i32, %arg1: memref<8x32xf32, #tpu.memory_space<vmem>>, %arg2: memref<16x32xf32, #tpu.memory_space<vmem>>, %arg3: memref<24x64xf32, #tpu.memory_space<vmem>>, %arg4: memref<8x24xbf16, #tpu.memory_space<vmem>>, %arg5: memref<8x16xbf16, #tpu.memory_space<vmem>>, %arg6: memref<64x128xbf16, #tpu.memory_space<vmem>>, %arg7: memref<4x64xbf16, #tpu.memory_space<vmem>>, %arg8: memref<32x128xbf16, #tpu.memory_space<vmem>>, %arg9: memref<4x32xbf16, #tpu.memory_space<vmem>>, %arg10: memref<32x8xbf16, #tpu.memory_space<vmem>>, %arg11: memref<1x128xf32, #tpu.memory_space<vmem>>, %arg12: memref<1x128xf32, #tpu.memory_space<vmem>>, %arg13: memref<256x128xbf16, #tpu.memory_space<vmem>>, %arg14: memref<1x128xf32, #tpu.memory_space<vmem>>, %arg15: memref<128x256xbf16, #tpu.memory_space<vmem>>, %arg16: memref<1x256xf32, #tpu.memory_space<vmem>>, %arg17: memref<256x32xbf16, #tpu.memory_space<vmem>>, %arg18: memref<1x32xf32, #tpu.memory_space<vmem>>, %arg19: memref<8x32xf32, #tpu.memory_space<vmem>>) attributes {dimension_semantics = [#tpu.dimension_semantics<parallel>], iteration_bounds = array<i64: 2>, scalar_prefetch = 0 : i64, scratch_operands = 0 : i64, tpu.core_type = #tpu.core_type<tc>, window_params = [{transform_indices = @transform_0, window_bounds = array<i64: 8, 32>}, {pipeline_mode = #tpu.pipeline_mode<synchronous>, transform_indices = @transform_1, window_bounds = array<i64: 16, 32>}, {pipeline_mode = #tpu.pipeline_mode<synchronous>, transform_indices = @transform_2, window_bounds = array<i64: 24, 64>}, {transform_indices = @transform_3, window_bounds = array<i64: 8, 24>}, {transform_indices = @transform_4, window_bounds = array<i64: 8, 16>}, {pipeline_mode = #tpu.pipeline_mode<synchronous>, transform_indices = @transform_5, window_bounds = array<i64: 64, 128>}, {pipeline_mode = #tpu.pipeline_mode<synchronous>, transform_indices = @transform_6, window_bounds = array<i64: 4, 64>}, {pipeline_mode = #tpu.pipeline_mode<synchronous>, transform_indices = @transform_7, window_bounds = array<i64: 32, 128>}, {pipeline_mode = #tpu.pipeline_mode<synchronous>, transform_indices = @transform_8, window_bounds = array<i64: 4, 32>}, {pipeline_mode = #tpu.pipeline_mode<synchronous>, transform_indices = @transform_9, window_bounds = array<i64: 32, 8>}, {pipeline_mode = #tpu.pipeline_mode<synchronous>, transform_indices = @transform_10, window_bounds = array<i64: 1, 128>}, {pipeline_mode = #tpu.pipeline_mode<synchronous>, transform_indices = @transform_11, window_bounds = array<i64: 1, 128>}, {pipeline_mode = #tpu.pipeline_mode<synchronous>, transform_indices = @transform_12, window_bounds = array<i64: 256, 128>}, {pipeline_mode = #tpu.pipeline_mode<synchronous>, transform_indices = @transform_13, window_bounds = array<i64: 1, 128>}, {pipeline_mode = #tpu.pipeline_mode<synchronous>, transform_indices = @transform_14, window_bounds = array<i64: 128, 256>}, {pipeline_mode = #tpu.pipeline_mode<synchronous>, transform_indices = @transform_15, window_bounds = array<i64: 1, 256>}, {pipeline_mode = #tpu.pipeline_mode<synchronous>, transform_indices = @transform_16, window_bounds = array<i64: 256, 32>}, {pipeline_mode = #tpu.pipeline_mode<synchronous>, transform_indices = @transform_17, window_bounds = array<i64: 1, 32>}, {transform_indices = @transform_18, window_bounds = array<i64: 8, 32>}]} {
    %c0 = arith.constant 0 : index
    %c0_0 = arith.constant 0 : index
    %0 = vector.load %arg1[%c0, %c0_0] : memref<8x32xf32, #tpu.memory_space<vmem>>, vector<8x32xf32>
    %1 = arith.truncf %0 : vector<8x32xf32> to vector<8x32xbf16>
    %c0_1 = arith.constant 0 : index
    %c0_2 = arith.constant 0 : index
    %2 = vector.load %arg2[%c0_1, %c0_2] : memref<16x32xf32, #tpu.memory_space<vmem>>, vector<16x32xf32>
    %3 = arith.truncf %2 : vector<16x32xf32> to vector<16x32xbf16>
    %c0_3 = arith.constant 0 : index
    %c0_4 = arith.constant 0 : index
    %4 = vector.load %arg3[%c0_3, %c0_4] : memref<24x64xf32, #tpu.memory_space<vmem>>, vector<24x64xf32>
    %5 = arith.truncf %4 : vector<24x64xf32> to vector<24x64xbf16>
    %c0_5 = arith.constant 0 : index
    %c0_6 = arith.constant 0 : index
    %6 = vector.load %arg4[%c0_5, %c0_6] : memref<8x24xbf16, #tpu.memory_space<vmem>>, vector<8x24xbf16>
    %cst = arith.constant 0.000000e+00 : bf16
    %7 = vector.broadcast %cst : bf16 to vector<8x24xbf16>
    %8 = arith.cmpf ogt, %6, %7 : vector<8x24xbf16>
    %c0_7 = arith.constant 0 : index
    %c0_8 = arith.constant 0 : index
    %9 = vector.load %arg5[%c0_7, %c0_8] : memref<8x16xbf16, #tpu.memory_space<vmem>>, vector<8x16xbf16>
    %cst_9 = arith.constant 0.000000e+00 : bf16
    %10 = vector.broadcast %cst_9 : bf16 to vector<8x16xbf16>
    %11 = arith.cmpf ogt, %9, %10 : vector<8x16xbf16>
    %c0_10 = arith.constant 0 : index
    %c0_11 = arith.constant 0 : index
    %12 = vector.load %arg6[%c0_10, %c0_11] : memref<64x128xbf16, #tpu.memory_space<vmem>>, vector<64x128xbf16>
    %cst_12 = arith.constant dense<0.000000e+00> : vector<24x128xf32>
    %13 = tpu.matmul %5, %12, %cst_12 {dimension_numbers = #tpu.dot_dimension_numbers<[1], [0], [0], [1], [0, 0, 1, 1], [], []>} : vector<24x64xbf16>, vector<64x128xbf16>, vector<24x128xf32> -> vector<24x128xf32>
    %c0_13 = arith.constant 0 : index
    %c0_14 = arith.constant 0 : index
    %14 = vector.load %arg8[%c0_13, %c0_14] : memref<32x128xbf16, #tpu.memory_space<vmem>>, vector<32x128xbf16>
    %cst_15 = arith.constant dense<0.000000e+00> : vector<16x128xf32>
    %15 = tpu.matmul %3, %14, %cst_15 {dimension_numbers = #tpu.dot_dimension_numbers<[1], [0], [0], [1], [0, 0, 1, 1], [], []>} : vector<16x32xbf16>, vector<32x128xbf16>, vector<16x128xf32> -> vector<16x128xf32>
    %c0_16 = arith.constant 0 : index
    %c0_17 = arith.constant 0 : index
    %16 = vector.load %arg7[%c0_16, %c0_17] : memref<4x64xbf16, #tpu.memory_space<vmem>>, vector<4x64xbf16>
    %cst_18 = arith.constant dense<0.000000e+00> : vector<4x24xf32>
    %17 = tpu.matmul %16, %5, %cst_18 {dimension_numbers = #tpu.dot_dimension_numbers<[1], [1], [0], [0], [0, 0, 1, 0], [], []>} : vector<4x64xbf16>, vector<24x64xbf16>, vector<4x24xf32> -> vector<4x24xf32>
    %c0_19 = arith.constant 0 : index
    %c0_20 = arith.constant 0 : index
    %18 = vector.load %arg9[%c0_19, %c0_20] : memref<4x32xbf16, #tpu.memory_space<vmem>>, vector<4x32xbf16>
    %cst_21 = arith.constant dense<0.000000e+00> : vector<4x16xf32>
    %19 = tpu.matmul %18, %3, %cst_21 {dimension_numbers = #tpu.dot_dimension_numbers<[1], [1], [0], [0], [0, 0, 1, 0], [], []>} : vector<4x32xbf16>, vector<16x32xbf16>, vector<4x16xf32> -> vector<4x16xf32>
    %c0_22 = arith.constant 0 : index
    %c0_23 = arith.constant 0 : index
    %20 = vector.load %arg10[%c0_22, %c0_23] : memref<32x8xbf16, #tpu.memory_space<vmem>>, vector<32x8xbf16>
    %cst_24 = arith.constant dense<0.000000e+00> : vector<8x8xf32>
    %21 = tpu.matmul %1, %20, %cst_24 {dimension_numbers = #tpu.dot_dimension_numbers<[1], [0], [0], [1], [0, 0, 1, 1], [], []>} : vector<8x32xbf16>, vector<32x8xbf16>, vector<8x8xf32> -> vector<8x8xf32>
    %22 = vector.extract_strided_slice %21 {offsets = [0, 0], sizes = [8, 4], strides = [1, 1]} : vector<8x8xf32> to vector<8x4xf32>
    %23 = vector.extract_strided_slice %21 {offsets = [0, 4], sizes = [8, 4], strides = [1, 1]} : vector<8x8xf32> to vector<8x4xf32>
    %24 = tpu.iota {dimensions = array<i32: 1>} : vector<24x128xi32>
    %25 = vector.extract_strided_slice %23 {offsets = [0, 0], sizes = [8, 1], strides = [1, 1]} : vector<8x4xf32> to vector<8x1xf32>
    %26 = vector.extract_strided_slice %17 {offsets = [0, 0], sizes = [1, 24], strides = [1, 1]} : vector<4x24xf32> to vector<1x24xf32>
    %27 = vector.broadcast %25 : vector<8x1xf32> to vector<8x24xf32>
    %28 = vector.broadcast %26 : vector<1x24xf32> to vector<8x24xf32>
    %29 = arith.addf %27, %28 : vector<8x24xf32>
    %cst_25 = arith.constant 0.000000e+00 : f32
    %30 = vector.broadcast %cst_25 : f32 to vector<8x24xf32>
    %31 = arith.cmpf ogt, %29, %30 : vector<8x24xf32>
    %cst_26 = arith.constant 2.000000e-01 : f32
    %32 = vector.broadcast %cst_26 : f32 to vector<8x24xf32>
    %33 = arith.mulf %32, %29 : vector<8x24xf32>
    %34 = arith.select %31, %29, %33 : vector<8x24xi1>, vector<8x24xf32>
    %cst_27 = arith.constant -1.000000e+30 : f32
    %35 = vector.broadcast %cst_27 : f32 to vector<8x24xf32>
    %36 = arith.select %8, %34, %35 : vector<8x24xi1>, vector<8x24xf32>
    %cst_28 = arith.constant dense<0xFF800000> : vector<8xf32>
    %37 = vector.multi_reduction <maximumf>, %36, %cst_28 [1] : vector<8x24xf32> to vector<8xf32>
    %38 = vector.shape_cast %37 : vector<8xf32> to vector<8x1xf32>
    %39 = vector.broadcast %38 : vector<8x1xf32> to vector<8x24xf32>
    %40 = arith.subf %36, %39 : vector<8x24xf32>
    %41 = math.exp %40 : vector<8x24xf32>
    %cst_29 = arith.constant 0.000000e+00 : f32
    %42 = vector.broadcast %cst_29 : f32 to vector<8x24xf32>
    %43 = arith.select %8, %41, %42 : vector<8x24xi1>, vector<8x24xf32>
    %cst_30 = arith.constant dense<0.000000e+00> : vector<8xf32>
    %44 = vector.multi_reduction <add>, %43, %cst_30 [1] : vector<8x24xf32> to vector<8xf32>
    %45 = vector.shape_cast %44 : vector<8xf32> to vector<8x1xf32>
    %cst_31 = arith.constant 1.000000e-16 : f32
    %46 = vector.broadcast %cst_31 : f32 to vector<8x1xf32>
    %47 = arith.addf %45, %46 : vector<8x1xf32>
    %48 = tpu.reciprocal %47 {approx = true} : vector<8x1xf32> -> vector<8x1xf32>
    %49 = vector.broadcast %48 : vector<8x1xf32> to vector<8x24xf32>
    %50 = arith.mulf %43, %49 : vector<8x24xf32>
    %c0_i32 = arith.constant 0 : i32
    %51 = vector.broadcast %c0_i32 : i32 to vector<24x128xi32>
    %52 = arith.cmpi sge, %24, %51 : vector<24x128xi32>
    %c32_i32 = arith.constant 32 : i32
    %53 = vector.broadcast %c32_i32 : i32 to vector<24x128xi32>
    %54 = arith.cmpi slt, %24, %53 : vector<24x128xi32>
    %55 = arith.andi %52, %54 : vector<24x128xi1>
    %cst_32 = arith.constant 0.000000e+00 : f32
    %56 = vector.broadcast %cst_32 : f32 to vector<24x128xf32>
    %57 = arith.select %55, %13, %56 : vector<24x128xi1>, vector<24x128xf32>
    %58 = arith.truncf %50 : vector<8x24xf32> to vector<8x24xbf16>
    %59 = arith.truncf %57 : vector<24x128xf32> to vector<24x128xbf16>
    %cst_33 = arith.constant dense<0.000000e+00> : vector<8x128xf32>
    %60 = tpu.matmul %58, %59, %cst_33 {dimension_numbers = #tpu.dot_dimension_numbers<[1], [0], [0], [1], [0, 0, 1, 1], [], []>} : vector<8x24xbf16>, vector<24x128xbf16>, vector<8x128xf32> -> vector<8x128xf32>
    %61 = vector.extract_strided_slice %23 {offsets = [0, 1], sizes = [8, 1], strides = [1, 1]} : vector<8x4xf32> to vector<8x1xf32>
    %62 = vector.extract_strided_slice %17 {offsets = [1, 0], sizes = [1, 24], strides = [1, 1]} : vector<4x24xf32> to vector<1x24xf32>
    %63 = vector.broadcast %61 : vector<8x1xf32> to vector<8x24xf32>
    %64 = vector.broadcast %62 : vector<1x24xf32> to vector<8x24xf32>
    %65 = arith.addf %63, %64 : vector<8x24xf32>
    %cst_34 = arith.constant 0.000000e+00 : f32
    %66 = vector.broadcast %cst_34 : f32 to vector<8x24xf32>
    %67 = arith.cmpf ogt, %65, %66 : vector<8x24xf32>
    %cst_35 = arith.constant 2.000000e-01 : f32
    %68 = vector.broadcast %cst_35 : f32 to vector<8x24xf32>
    %69 = arith.mulf %68, %65 : vector<8x24xf32>
    %70 = arith.select %67, %65, %69 : vector<8x24xi1>, vector<8x24xf32>
    %cst_36 = arith.constant -1.000000e+30 : f32
    %71 = vector.broadcast %cst_36 : f32 to vector<8x24xf32>
    %72 = arith.select %8, %70, %71 : vector<8x24xi1>, vector<8x24xf32>
    %cst_37 = arith.constant dense<0xFF800000> : vector<8xf32>
    %73 = vector.multi_reduction <maximumf>, %72, %cst_37 [1] : vector<8x24xf32> to vector<8xf32>
    %74 = vector.shape_cast %73 : vector<8xf32> to vector<8x1xf32>
    %75 = vector.broadcast %74 : vector<8x1xf32> to vector<8x24xf32>
    %76 = arith.subf %72, %75 : vector<8x24xf32>
    %77 = math.exp %76 : vector<8x24xf32>
    %cst_38 = arith.constant 0.000000e+00 : f32
    %78 = vector.broadcast %cst_38 : f32 to vector<8x24xf32>
    %79 = arith.select %8, %77, %78 : vector<8x24xi1>, vector<8x24xf32>
    %cst_39 = arith.constant dense<0.000000e+00> : vector<8xf32>
    %80 = vector.multi_reduction <add>, %79, %cst_39 [1] : vector<8x24xf32> to vector<8xf32>
    %81 = vector.shape_cast %80 : vector<8xf32> to vector<8x1xf32>
    %cst_40 = arith.constant 1.000000e-16 : f32
    %82 = vector.broadcast %cst_40 : f32 to vector<8x1xf32>
    %83 = arith.addf %81, %82 : vector<8x1xf32>
    %84 = tpu.reciprocal %83 {approx = true} : vector<8x1xf32> -> vector<8x1xf32>
    %85 = vector.broadcast %84 : vector<8x1xf32> to vector<8x24xf32>
    %86 = arith.mulf %79, %85 : vector<8x24xf32>
    %c32_i32_41 = arith.constant 32 : i32
    %87 = vector.broadcast %c32_i32_41 : i32 to vector<24x128xi32>
    %88 = arith.cmpi sge, %24, %87 : vector<24x128xi32>
    %c64_i32 = arith.constant 64 : i32
    %89 = vector.broadcast %c64_i32 : i32 to vector<24x128xi32>
    %90 = arith.cmpi slt, %24, %89 : vector<24x128xi32>
    %91 = arith.andi %88, %90 : vector<24x128xi1>
    %cst_42 = arith.constant 0.000000e+00 : f32
    %92 = vector.broadcast %cst_42 : f32 to vector<24x128xf32>
    %93 = arith.select %91, %13, %92 : vector<24x128xi1>, vector<24x128xf32>
    %94 = arith.truncf %86 : vector<8x24xf32> to vector<8x24xbf16>
    %95 = arith.truncf %93 : vector<24x128xf32> to vector<24x128xbf16>
    %cst_43 = arith.constant dense<0.000000e+00> : vector<8x128xf32>
    %96 = tpu.matmul %94, %95, %cst_43 {dimension_numbers = #tpu.dot_dimension_numbers<[1], [0], [0], [1], [0, 0, 1, 1], [], []>} : vector<8x24xbf16>, vector<24x128xbf16>, vector<8x128xf32> -> vector<8x128xf32>
    %97 = arith.addf %60, %96 : vector<8x128xf32>
    %98 = vector.extract_strided_slice %23 {offsets = [0, 2], sizes = [8, 1], strides = [1, 1]} : vector<8x4xf32> to vector<8x1xf32>
    %99 = vector.extract_strided_slice %17 {offsets = [2, 0], sizes = [1, 24], strides = [1, 1]} : vector<4x24xf32> to vector<1x24xf32>
    %100 = vector.broadcast %98 : vector<8x1xf32> to vector<8x24xf32>
    %101 = vector.broadcast %99 : vector<1x24xf32> to vector<8x24xf32>
    %102 = arith.addf %100, %101 : vector<8x24xf32>
    %cst_44 = arith.constant 0.000000e+00 : f32
    %103 = vector.broadcast %cst_44 : f32 to vector<8x24xf32>
    %104 = arith.cmpf ogt, %102, %103 : vector<8x24xf32>
    %cst_45 = arith.constant 2.000000e-01 : f32
    %105 = vector.broadcast %cst_45 : f32 to vector<8x24xf32>
    %106 = arith.mulf %105, %102 : vector<8x24xf32>
    %107 = arith.select %104, %102, %106 : vector<8x24xi1>, vector<8x24xf32>
    %cst_46 = arith.constant -1.000000e+30 : f32
    %108 = vector.broadcast %cst_46 : f32 to vector<8x24xf32>
    %109 = arith.select %8, %107, %108 : vector<8x24xi1>, vector<8x24xf32>
    %cst_47 = arith.constant dense<0xFF800000> : vector<8xf32>
    %110 = vector.multi_reduction <maximumf>, %109, %cst_47 [1] : vector<8x24xf32> to vector<8xf32>
    %111 = vector.shape_cast %110 : vector<8xf32> to vector<8x1xf32>
    %112 = vector.broadcast %111 : vector<8x1xf32> to vector<8x24xf32>
    %113 = arith.subf %109, %112 : vector<8x24xf32>
    %114 = math.exp %113 : vector<8x24xf32>
    %cst_48 = arith.constant 0.000000e+00 : f32
    %115 = vector.broadcast %cst_48 : f32 to vector<8x24xf32>
    %116 = arith.select %8, %114, %115 : vector<8x24xi1>, vector<8x24xf32>
    %cst_49 = arith.constant dense<0.000000e+00> : vector<8xf32>
    %117 = vector.multi_reduction <add>, %116, %cst_49 [1] : vector<8x24xf32> to vector<8xf32>
    %118 = vector.shape_cast %117 : vector<8xf32> to vector<8x1xf32>
    %cst_50 = arith.constant 1.000000e-16 : f32
    %119 = vector.broadcast %cst_50 : f32 to vector<8x1xf32>
    %120 = arith.addf %118, %119 : vector<8x1xf32>
    %121 = tpu.reciprocal %120 {approx = true} : vector<8x1xf32> -> vector<8x1xf32>
    %122 = vector.broadcast %121 : vector<8x1xf32> to vector<8x24xf32>
    %123 = arith.mulf %116, %122 : vector<8x24xf32>
    %c64_i32_51 = arith.constant 64 : i32
    %124 = vector.broadcast %c64_i32_51 : i32 to vector<24x128xi32>
    %125 = arith.cmpi sge, %24, %124 : vector<24x128xi32>
    %c96_i32 = arith.constant 96 : i32
    %126 = vector.broadcast %c96_i32 : i32 to vector<24x128xi32>
    %127 = arith.cmpi slt, %24, %126 : vector<24x128xi32>
    %128 = arith.andi %125, %127 : vector<24x128xi1>
    %cst_52 = arith.constant 0.000000e+00 : f32
    %129 = vector.broadcast %cst_52 : f32 to vector<24x128xf32>
    %130 = arith.select %128, %13, %129 : vector<24x128xi1>, vector<24x128xf32>
    %131 = arith.truncf %123 : vector<8x24xf32> to vector<8x24xbf16>
    %132 = arith.truncf %130 : vector<24x128xf32> to vector<24x128xbf16>
    %cst_53 = arith.constant dense<0.000000e+00> : vector<8x128xf32>
    %133 = tpu.matmul %131, %132, %cst_53 {dimension_numbers = #tpu.dot_dimension_numbers<[1], [0], [0], [1], [0, 0, 1, 1], [], []>} : vector<8x24xbf16>, vector<24x128xbf16>, vector<8x128xf32> -> vector<8x128xf32>
    %134 = arith.addf %97, %133 : vector<8x128xf32>
    %135 = vector.extract_strided_slice %23 {offsets = [0, 3], sizes = [8, 1], strides = [1, 1]} : vector<8x4xf32> to vector<8x1xf32>
    %136 = vector.extract_strided_slice %17 {offsets = [3, 0], sizes = [1, 24], strides = [1, 1]} : vector<4x24xf32> to vector<1x24xf32>
    %137 = vector.broadcast %135 : vector<8x1xf32> to vector<8x24xf32>
    %138 = vector.broadcast %136 : vector<1x24xf32> to vector<8x24xf32>
    %139 = arith.addf %137, %138 : vector<8x24xf32>
    %cst_54 = arith.constant 0.000000e+00 : f32
    %140 = vector.broadcast %cst_54 : f32 to vector<8x24xf32>
    %141 = arith.cmpf ogt, %139, %140 : vector<8x24xf32>
    %cst_55 = arith.constant 2.000000e-01 : f32
    %142 = vector.broadcast %cst_55 : f32 to vector<8x24xf32>
    %143 = arith.mulf %142, %139 : vector<8x24xf32>
    %144 = arith.select %141, %139, %143 : vector<8x24xi1>, vector<8x24xf32>
    %cst_56 = arith.constant -1.000000e+30 : f32
    %145 = vector.broadcast %cst_56 : f32 to vector<8x24xf32>
    %146 = arith.select %8, %144, %145 : vector<8x24xi1>, vector<8x24xf32>
    %cst_57 = arith.constant dense<0xFF800000> : vector<8xf32>
    %147 = vector.multi_reduction <maximumf>, %146, %cst_57 [1] : vector<8x24xf32> to vector<8xf32>
    %148 = vector.shape_cast %147 : vector<8xf32> to vector<8x1xf32>
    %149 = vector.broadcast %148 : vector<8x1xf32> to vector<8x24xf32>
    %150 = arith.subf %146, %149 : vector<8x24xf32>
    %151 = math.exp %150 : vector<8x24xf32>
    %cst_58 = arith.constant 0.000000e+00 : f32
    %152 = vector.broadcast %cst_58 : f32 to vector<8x24xf32>
    %153 = arith.select %8, %151, %152 : vector<8x24xi1>, vector<8x24xf32>
    %cst_59 = arith.constant dense<0.000000e+00> : vector<8xf32>
    %154 = vector.multi_reduction <add>, %153, %cst_59 [1] : vector<8x24xf32> to vector<8xf32>
    %155 = vector.shape_cast %154 : vector<8xf32> to vector<8x1xf32>
    %cst_60 = arith.constant 1.000000e-16 : f32
    %156 = vector.broadcast %cst_60 : f32 to vector<8x1xf32>
    %157 = arith.addf %155, %156 : vector<8x1xf32>
    %158 = tpu.reciprocal %157 {approx = true} : vector<8x1xf32> -> vector<8x1xf32>
    %159 = vector.broadcast %158 : vector<8x1xf32> to vector<8x24xf32>
    %160 = arith.mulf %153, %159 : vector<8x24xf32>
    %c96_i32_61 = arith.constant 96 : i32
    %161 = vector.broadcast %c96_i32_61 : i32 to vector<24x128xi32>
    %162 = arith.cmpi sge, %24, %161 : vector<24x128xi32>
    %c128_i32 = arith.constant 128 : i32
    %163 = vector.broadcast %c128_i32 : i32 to vector<24x128xi32>
    %164 = arith.cmpi slt, %24, %163 : vector<24x128xi32>
    %165 = arith.andi %162, %164 : vector<24x128xi1>
    %cst_62 = arith.constant 0.000000e+00 : f32
    %166 = vector.broadcast %cst_62 : f32 to vector<24x128xf32>
    %167 = arith.select %165, %13, %166 : vector<24x128xi1>, vector<24x128xf32>
    %168 = arith.truncf %160 : vector<8x24xf32> to vector<8x24xbf16>
    %169 = arith.truncf %167 : vector<24x128xf32> to vector<24x128xbf16>
    %cst_63 = arith.constant dense<0.000000e+00> : vector<8x128xf32>
    %170 = tpu.matmul %168, %169, %cst_63 {dimension_numbers = #tpu.dot_dimension_numbers<[1], [0], [0], [1], [0, 0, 1, 1], [], []>} : vector<8x24xbf16>, vector<24x128xbf16>, vector<8x128xf32> -> vector<8x128xf32>
    %171 = arith.addf %134, %170 : vector<8x128xf32>
    %c0_64 = arith.constant 0 : index
    %c0_65 = arith.constant 0 : index
    %172 = vector.load %arg11[%c0_64, %c0_65] : memref<1x128xf32, #tpu.memory_space<vmem>>, vector<1x128xf32>
    %173 = vector.broadcast %172 : vector<1x128xf32> to vector<8x128xf32>
    %174 = arith.addf %171, %173 : vector<8x128xf32>
    %cst_66 = arith.constant 0.000000e+00 : f32
    %175 = vector.broadcast %cst_66 : f32 to vector<8x128xf32>
    %176 = arith.cmpf ogt, %174, %175 : vector<8x128xf32>
    %177 = math.exp %174 : vector<8x128xf32>
    %cst_67 = arith.constant 1.000000e+00 : f32
    %178 = vector.broadcast %cst_67 : f32 to vector<8x128xf32>
    %179 = arith.subf %177, %178 : vector<8x128xf32>
    %180 = arith.select %176, %174, %179 : vector<8x128xi1>, vector<8x128xf32>
    %181 = tpu.iota {dimensions = array<i32: 1>} : vector<16x128xi32>
    %182 = vector.extract_strided_slice %22 {offsets = [0, 0], sizes = [8, 1], strides = [1, 1]} : vector<8x4xf32> to vector<8x1xf32>
    %183 = vector.extract_strided_slice %19 {offsets = [0, 0], sizes = [1, 16], strides = [1, 1]} : vector<4x16xf32> to vector<1x16xf32>
    %184 = vector.broadcast %182 : vector<8x1xf32> to vector<8x16xf32>
    %185 = vector.broadcast %183 : vector<1x16xf32> to vector<8x16xf32>
    %186 = arith.addf %184, %185 : vector<8x16xf32>
    %cst_68 = arith.constant 0.000000e+00 : f32
    %187 = vector.broadcast %cst_68 : f32 to vector<8x16xf32>
    %188 = arith.cmpf ogt, %186, %187 : vector<8x16xf32>
    %cst_69 = arith.constant 2.000000e-01 : f32
    %189 = vector.broadcast %cst_69 : f32 to vector<8x16xf32>
    %190 = arith.mulf %189, %186 : vector<8x16xf32>
    %191 = arith.select %188, %186, %190 : vector<8x16xi1>, vector<8x16xf32>
    %cst_70 = arith.constant -1.000000e+30 : f32
    %192 = vector.broadcast %cst_70 : f32 to vector<8x16xf32>
    %193 = arith.select %11, %191, %192 : vector<8x16xi1>, vector<8x16xf32>
    %cst_71 = arith.constant dense<0xFF800000> : vector<8xf32>
    %194 = vector.multi_reduction <maximumf>, %193, %cst_71 [1] : vector<8x16xf32> to vector<8xf32>
    %195 = vector.shape_cast %194 : vector<8xf32> to vector<8x1xf32>
    %196 = vector.broadcast %195 : vector<8x1xf32> to vector<8x16xf32>
    %197 = arith.subf %193, %196 : vector<8x16xf32>
    %198 = math.exp %197 : vector<8x16xf32>
    %cst_72 = arith.constant 0.000000e+00 : f32
    %199 = vector.broadcast %cst_72 : f32 to vector<8x16xf32>
    %200 = arith.select %11, %198, %199 : vector<8x16xi1>, vector<8x16xf32>
    %cst_73 = arith.constant dense<0.000000e+00> : vector<8xf32>
    %201 = vector.multi_reduction <add>, %200, %cst_73 [1] : vector<8x16xf32> to vector<8xf32>
    %202 = vector.shape_cast %201 : vector<8xf32> to vector<8x1xf32>
    %cst_74 = arith.constant 1.000000e-16 : f32
    %203 = vector.broadcast %cst_74 : f32 to vector<8x1xf32>
    %204 = arith.addf %202, %203 : vector<8x1xf32>
    %205 = tpu.reciprocal %204 {approx = true} : vector<8x1xf32> -> vector<8x1xf32>
    %206 = vector.broadcast %205 : vector<8x1xf32> to vector<8x16xf32>
    %207 = arith.mulf %200, %206 : vector<8x16xf32>
    %c0_i32_75 = arith.constant 0 : i32
    %208 = vector.broadcast %c0_i32_75 : i32 to vector<16x128xi32>
    %209 = arith.cmpi sge, %181, %208 : vector<16x128xi32>
    %c32_i32_76 = arith.constant 32 : i32
    %210 = vector.broadcast %c32_i32_76 : i32 to vector<16x128xi32>
    %211 = arith.cmpi slt, %181, %210 : vector<16x128xi32>
    %212 = arith.andi %209, %211 : vector<16x128xi1>
    %cst_77 = arith.constant 0.000000e+00 : f32
    %213 = vector.broadcast %cst_77 : f32 to vector<16x128xf32>
    %214 = arith.select %212, %15, %213 : vector<16x128xi1>, vector<16x128xf32>
    %215 = arith.truncf %207 : vector<8x16xf32> to vector<8x16xbf16>
    %216 = arith.truncf %214 : vector<16x128xf32> to vector<16x128xbf16>
    %cst_78 = arith.constant dense<0.000000e+00> : vector<8x128xf32>
    %217 = tpu.matmul %215, %216, %cst_78 {dimension_numbers = #tpu.dot_dimension_numbers<[1], [0], [0], [1], [0, 0, 1, 1], [], []>} : vector<8x16xbf16>, vector<16x128xbf16>, vector<8x128xf32> -> vector<8x128xf32>
    %218 = vector.extract_strided_slice %22 {offsets = [0, 1], sizes = [8, 1], strides = [1, 1]} : vector<8x4xf32> to vector<8x1xf32>
    %219 = vector.extract_strided_slice %19 {offsets = [1, 0], sizes = [1, 16], strides = [1, 1]} : vector<4x16xf32> to vector<1x16xf32>
    %220 = vector.broadcast %218 : vector<8x1xf32> to vector<8x16xf32>
    %221 = vector.broadcast %219 : vector<1x16xf32> to vector<8x16xf32>
    %222 = arith.addf %220, %221 : vector<8x16xf32>
    %cst_79 = arith.constant 0.000000e+00 : f32
    %223 = vector.broadcast %cst_79 : f32 to vector<8x16xf32>
    %224 = arith.cmpf ogt, %222, %223 : vector<8x16xf32>
    %cst_80 = arith.constant 2.000000e-01 : f32
    %225 = vector.broadcast %cst_80 : f32 to vector<8x16xf32>
    %226 = arith.mulf %225, %222 : vector<8x16xf32>
    %227 = arith.select %224, %222, %226 : vector<8x16xi1>, vector<8x16xf32>
    %cst_81 = arith.constant -1.000000e+30 : f32
    %228 = vector.broadcast %cst_81 : f32 to vector<8x16xf32>
    %229 = arith.select %11, %227, %228 : vector<8x16xi1>, vector<8x16xf32>
    %cst_82 = arith.constant dense<0xFF800000> : vector<8xf32>
    %230 = vector.multi_reduction <maximumf>, %229, %cst_82 [1] : vector<8x16xf32> to vector<8xf32>
    %231 = vector.shape_cast %230 : vector<8xf32> to vector<8x1xf32>
    %232 = vector.broadcast %231 : vector<8x1xf32> to vector<8x16xf32>
    %233 = arith.subf %229, %232 : vector<8x16xf32>
    %234 = math.exp %233 : vector<8x16xf32>
    %cst_83 = arith.constant 0.000000e+00 : f32
    %235 = vector.broadcast %cst_83 : f32 to vector<8x16xf32>
    %236 = arith.select %11, %234, %235 : vector<8x16xi1>, vector<8x16xf32>
    %cst_84 = arith.constant dense<0.000000e+00> : vector<8xf32>
    %237 = vector.multi_reduction <add>, %236, %cst_84 [1] : vector<8x16xf32> to vector<8xf32>
    %238 = vector.shape_cast %237 : vector<8xf32> to vector<8x1xf32>
    %cst_85 = arith.constant 1.000000e-16 : f32
    %239 = vector.broadcast %cst_85 : f32 to vector<8x1xf32>
    %240 = arith.addf %238, %239 : vector<8x1xf32>
    %241 = tpu.reciprocal %240 {approx = true} : vector<8x1xf32> -> vector<8x1xf32>
    %242 = vector.broadcast %241 : vector<8x1xf32> to vector<8x16xf32>
    %243 = arith.mulf %236, %242 : vector<8x16xf32>
    %c32_i32_86 = arith.constant 32 : i32
    %244 = vector.broadcast %c32_i32_86 : i32 to vector<16x128xi32>
    %245 = arith.cmpi sge, %181, %244 : vector<16x128xi32>
    %c64_i32_87 = arith.constant 64 : i32
    %246 = vector.broadcast %c64_i32_87 : i32 to vector<16x128xi32>
    %247 = arith.cmpi slt, %181, %246 : vector<16x128xi32>
    %248 = arith.andi %245, %247 : vector<16x128xi1>
    %cst_88 = arith.constant 0.000000e+00 : f32
    %249 = vector.broadcast %cst_88 : f32 to vector<16x128xf32>
    %250 = arith.select %248, %15, %249 : vector<16x128xi1>, vector<16x128xf32>
    %251 = arith.truncf %243 : vector<8x16xf32> to vector<8x16xbf16>
    %252 = arith.truncf %250 : vector<16x128xf32> to vector<16x128xbf16>
    %cst_89 = arith.constant dense<0.000000e+00> : vector<8x128xf32>
    %253 = tpu.matmul %251, %252, %cst_89 {dimension_numbers = #tpu.dot_dimension_numbers<[1], [0], [0], [1], [0, 0, 1, 1], [], []>} : vector<8x16xbf16>, vector<16x128xbf16>, vector<8x128xf32> -> vector<8x128xf32>
    %254 = arith.addf %217, %253 : vector<8x128xf32>
    %255 = vector.extract_strided_slice %22 {offsets = [0, 2], sizes = [8, 1], strides = [1, 1]} : vector<8x4xf32> to vector<8x1xf32>
    %256 = vector.extract_strided_slice %19 {offsets = [2, 0], sizes = [1, 16], strides = [1, 1]} : vector<4x16xf32> to vector<1x16xf32>
    %257 = vector.broadcast %255 : vector<8x1xf32> to vector<8x16xf32>
    %258 = vector.broadcast %256 : vector<1x16xf32> to vector<8x16xf32>
    %259 = arith.addf %257, %258 : vector<8x16xf32>
    %cst_90 = arith.constant 0.000000e+00 : f32
    %260 = vector.broadcast %cst_90 : f32 to vector<8x16xf32>
    %261 = arith.cmpf ogt, %259, %260 : vector<8x16xf32>
    %cst_91 = arith.constant 2.000000e-01 : f32
    %262 = vector.broadcast %cst_91 : f32 to vector<8x16xf32>
    %263 = arith.mulf %262, %259 : vector<8x16xf32>
    %264 = arith.select %261, %259, %263 : vector<8x16xi1>, vector<8x16xf32>
    %cst_92 = arith.constant -1.000000e+30 : f32
    %265 = vector.broadcast %cst_92 : f32 to vector<8x16xf32>
    %266 = arith.select %11, %264, %265 : vector<8x16xi1>, vector<8x16xf32>
    %cst_93 = arith.constant dense<0xFF800000> : vector<8xf32>
    %267 = vector.multi_reduction <maximumf>, %266, %cst_93 [1] : vector<8x16xf32> to vector<8xf32>
    %268 = vector.shape_cast %267 : vector<8xf32> to vector<8x1xf32>
    %269 = vector.broadcast %268 : vector<8x1xf32> to vector<8x16xf32>
    %270 = arith.subf %266, %269 : vector<8x16xf32>
    %271 = math.exp %270 : vector<8x16xf32>
    %cst_94 = arith.constant 0.000000e+00 : f32
    %272 = vector.broadcast %cst_94 : f32 to vector<8x16xf32>
    %273 = arith.select %11, %271, %272 : vector<8x16xi1>, vector<8x16xf32>
    %cst_95 = arith.constant dense<0.000000e+00> : vector<8xf32>
    %274 = vector.multi_reduction <add>, %273, %cst_95 [1] : vector<8x16xf32> to vector<8xf32>
    %275 = vector.shape_cast %274 : vector<8xf32> to vector<8x1xf32>
    %cst_96 = arith.constant 1.000000e-16 : f32
    %276 = vector.broadcast %cst_96 : f32 to vector<8x1xf32>
    %277 = arith.addf %275, %276 : vector<8x1xf32>
    %278 = tpu.reciprocal %277 {approx = true} : vector<8x1xf32> -> vector<8x1xf32>
    %279 = vector.broadcast %278 : vector<8x1xf32> to vector<8x16xf32>
    %280 = arith.mulf %273, %279 : vector<8x16xf32>
    %c64_i32_97 = arith.constant 64 : i32
    %281 = vector.broadcast %c64_i32_97 : i32 to vector<16x128xi32>
    %282 = arith.cmpi sge, %181, %281 : vector<16x128xi32>
    %c96_i32_98 = arith.constant 96 : i32
    %283 = vector.broadcast %c96_i32_98 : i32 to vector<16x128xi32>
    %284 = arith.cmpi slt, %181, %283 : vector<16x128xi32>
    %285 = arith.andi %282, %284 : vector<16x128xi1>
    %cst_99 = arith.constant 0.000000e+00 : f32
    %286 = vector.broadcast %cst_99 : f32 to vector<16x128xf32>
    %287 = arith.select %285, %15, %286 : vector<16x128xi1>, vector<16x128xf32>
    %288 = arith.truncf %280 : vector<8x16xf32> to vector<8x16xbf16>
    %289 = arith.truncf %287 : vector<16x128xf32> to vector<16x128xbf16>
    %cst_100 = arith.constant dense<0.000000e+00> : vector<8x128xf32>
    %290 = tpu.matmul %288, %289, %cst_100 {dimension_numbers = #tpu.dot_dimension_numbers<[1], [0], [0], [1], [0, 0, 1, 1], [], []>} : vector<8x16xbf16>, vector<16x128xbf16>, vector<8x128xf32> -> vector<8x128xf32>
    %291 = arith.addf %254, %290 : vector<8x128xf32>
    %292 = vector.extract_strided_slice %22 {offsets = [0, 3], sizes = [8, 1], strides = [1, 1]} : vector<8x4xf32> to vector<8x1xf32>
    %293 = vector.extract_strided_slice %19 {offsets = [3, 0], sizes = [1, 16], strides = [1, 1]} : vector<4x16xf32> to vector<1x16xf32>
    %294 = vector.broadcast %292 : vector<8x1xf32> to vector<8x16xf32>
    %295 = vector.broadcast %293 : vector<1x16xf32> to vector<8x16xf32>
    %296 = arith.addf %294, %295 : vector<8x16xf32>
    %cst_101 = arith.constant 0.000000e+00 : f32
    %297 = vector.broadcast %cst_101 : f32 to vector<8x16xf32>
    %298 = arith.cmpf ogt, %296, %297 : vector<8x16xf32>
    %cst_102 = arith.constant 2.000000e-01 : f32
    %299 = vector.broadcast %cst_102 : f32 to vector<8x16xf32>
    %300 = arith.mulf %299, %296 : vector<8x16xf32>
    %301 = arith.select %298, %296, %300 : vector<8x16xi1>, vector<8x16xf32>
    %cst_103 = arith.constant -1.000000e+30 : f32
    %302 = vector.broadcast %cst_103 : f32 to vector<8x16xf32>
    %303 = arith.select %11, %301, %302 : vector<8x16xi1>, vector<8x16xf32>
    %cst_104 = arith.constant dense<0xFF800000> : vector<8xf32>
    %304 = vector.multi_reduction <maximumf>, %303, %cst_104 [1] : vector<8x16xf32> to vector<8xf32>
    %305 = vector.shape_cast %304 : vector<8xf32> to vector<8x1xf32>
    %306 = vector.broadcast %305 : vector<8x1xf32> to vector<8x16xf32>
    %307 = arith.subf %303, %306 : vector<8x16xf32>
    %308 = math.exp %307 : vector<8x16xf32>
    %cst_105 = arith.constant 0.000000e+00 : f32
    %309 = vector.broadcast %cst_105 : f32 to vector<8x16xf32>
    %310 = arith.select %11, %308, %309 : vector<8x16xi1>, vector<8x16xf32>
    %cst_106 = arith.constant dense<0.000000e+00> : vector<8xf32>
    %311 = vector.multi_reduction <add>, %310, %cst_106 [1] : vector<8x16xf32> to vector<8xf32>
    %312 = vector.shape_cast %311 : vector<8xf32> to vector<8x1xf32>
    %cst_107 = arith.constant 1.000000e-16 : f32
    %313 = vector.broadcast %cst_107 : f32 to vector<8x1xf32>
    %314 = arith.addf %312, %313 : vector<8x1xf32>
    %315 = tpu.reciprocal %314 {approx = true} : vector<8x1xf32> -> vector<8x1xf32>
    %316 = vector.broadcast %315 : vector<8x1xf32> to vector<8x16xf32>
    %317 = arith.mulf %310, %316 : vector<8x16xf32>
    %c96_i32_108 = arith.constant 96 : i32
    %318 = vector.broadcast %c96_i32_108 : i32 to vector<16x128xi32>
    %319 = arith.cmpi sge, %181, %318 : vector<16x128xi32>
    %c128_i32_109 = arith.constant 128 : i32
    %320 = vector.broadcast %c128_i32_109 : i32 to vector<16x128xi32>
    %321 = arith.cmpi slt, %181, %320 : vector<16x128xi32>
    %322 = arith.andi %319, %321 : vector<16x128xi1>
    %cst_110 = arith.constant 0.000000e+00 : f32
    %323 = vector.broadcast %cst_110 : f32 to vector<16x128xf32>
    %324 = arith.select %322, %15, %323 : vector<16x128xi1>, vector<16x128xf32>
    %325 = arith.truncf %317 : vector<8x16xf32> to vector<8x16xbf16>
    %326 = arith.truncf %324 : vector<16x128xf32> to vector<16x128xbf16>
    %cst_111 = arith.constant dense<0.000000e+00> : vector<8x128xf32>
    %327 = tpu.matmul %325, %326, %cst_111 {dimension_numbers = #tpu.dot_dimension_numbers<[1], [0], [0], [1], [0, 0, 1, 1], [], []>} : vector<8x16xbf16>, vector<16x128xbf16>, vector<8x128xf32> -> vector<8x128xf32>
    %328 = arith.addf %291, %327 : vector<8x128xf32>
    %c0_112 = arith.constant 0 : index
    %c0_113 = arith.constant 0 : index
    %329 = vector.load %arg12[%c0_112, %c0_113] : memref<1x128xf32, #tpu.memory_space<vmem>>, vector<1x128xf32>
    %330 = vector.broadcast %329 : vector<1x128xf32> to vector<8x128xf32>
    %331 = arith.addf %328, %330 : vector<8x128xf32>
    %cst_114 = arith.constant 0.000000e+00 : f32
    %332 = vector.broadcast %cst_114 : f32 to vector<8x128xf32>
    %333 = arith.cmpf ogt, %331, %332 : vector<8x128xf32>
    %334 = math.exp %331 : vector<8x128xf32>
    %cst_115 = arith.constant 1.000000e+00 : f32
    %335 = vector.broadcast %cst_115 : f32 to vector<8x128xf32>
    %336 = arith.subf %334, %335 : vector<8x128xf32>
    %337 = arith.select %333, %331, %336 : vector<8x128xi1>, vector<8x128xf32>
    %338 = tpu.concatenate %337, %180 in 1 : vector<8x128xf32>, vector<8x128xf32> -> vector<8x256xf32>
    %339 = arith.truncf %338 : vector<8x256xf32> to vector<8x256xbf16>
    %c0_116 = arith.constant 0 : index
    %c0_117 = arith.constant 0 : index
    %340 = vector.load %arg13[%c0_116, %c0_117] : memref<256x128xbf16, #tpu.memory_space<vmem>>, vector<256x128xbf16>
    %cst_118 = arith.constant dense<0.000000e+00> : vector<8x128xf32>
    %341 = tpu.matmul %339, %340, %cst_118 {dimension_numbers = #tpu.dot_dimension_numbers<[1], [0], [0], [1], [0, 0, 1, 1], [], []>} : vector<8x256xbf16>, vector<256x128xbf16>, vector<8x128xf32> -> vector<8x128xf32>
    %c0_119 = arith.constant 0 : index
    %c0_120 = arith.constant 0 : index
    %342 = vector.load %arg14[%c0_119, %c0_120] : memref<1x128xf32, #tpu.memory_space<vmem>>, vector<1x128xf32>
    %343 = vector.broadcast %342 : vector<1x128xf32> to vector<8x128xf32>
    %344 = arith.addf %341, %343 : vector<8x128xf32>
    %cst_121 = arith.constant 0.000000e+00 : f32
    %345 = vector.broadcast %cst_121 : f32 to vector<8x128xf32>
    %346 = arith.subf %345, %344 : vector<8x128xf32>
    %347 = math.exp %346 : vector<8x128xf32>
    %cst_122 = arith.constant 1.000000e+00 : f32
    %348 = vector.broadcast %cst_122 : f32 to vector<8x128xf32>
    %349 = arith.addf %348, %347 : vector<8x128xf32>
    %cst_123 = arith.constant 1.000000e+00 : f32
    %350 = vector.broadcast %cst_123 : f32 to vector<8x128xf32>
    %351 = arith.divf %350, %349 : vector<8x128xf32>
    %352 = arith.mulf %351, %337 : vector<8x128xf32>
    %cst_124 = arith.constant 1.000000e+00 : f32
    %353 = vector.broadcast %cst_124 : f32 to vector<8x128xf32>
    %354 = arith.subf %353, %351 : vector<8x128xf32>
    %355 = arith.mulf %354, %180 : vector<8x128xf32>
    %356 = arith.addf %352, %355 : vector<8x128xf32>
    %357 = arith.truncf %356 : vector<8x128xf32> to vector<8x128xbf16>
    %c0_125 = arith.constant 0 : index
    %c0_126 = arith.constant 0 : index
    %358 = vector.load %arg15[%c0_125, %c0_126] : memref<128x256xbf16, #tpu.memory_space<vmem>>, vector<128x256xbf16>
    %cst_127 = arith.constant dense<0.000000e+00> : vector<8x256xf32>
    %359 = tpu.matmul %357, %358, %cst_127 {dimension_numbers = #tpu.dot_dimension_numbers<[1], [0], [0], [1], [0, 0, 1, 1], [], []>} : vector<8x128xbf16>, vector<128x256xbf16>, vector<8x256xf32> -> vector<8x256xf32>
    %c0_128 = arith.constant 0 : index
    %c0_129 = arith.constant 0 : index
    %360 = vector.load %arg16[%c0_128, %c0_129] : memref<1x256xf32, #tpu.memory_space<vmem>>, vector<1x256xf32>
    %361 = vector.broadcast %360 : vector<1x256xf32> to vector<8x256xf32>
    %362 = arith.addf %359, %361 : vector<8x256xf32>
    %363 = arith.truncf %362 : vector<8x256xf32> to vector<8x256xbf16>
    %c0_130 = arith.constant 0 : index
    %c0_131 = arith.constant 0 : index
    %364 = vector.load %arg17[%c0_130, %c0_131] : memref<256x32xbf16, #tpu.memory_space<vmem>>, vector<256x32xbf16>
    %cst_132 = arith.constant dense<0.000000e+00> : vector<8x32xf32>
    %365 = tpu.matmul %363, %364, %cst_132 {dimension_numbers = #tpu.dot_dimension_numbers<[1], [0], [0], [1], [0, 0, 1, 1], [], []>} : vector<8x256xbf16>, vector<256x32xbf16>, vector<8x32xf32> -> vector<8x32xf32>
    %c0_133 = arith.constant 0 : index
    %c0_134 = arith.constant 0 : index
    %366 = vector.load %arg18[%c0_133, %c0_134] : memref<1x32xf32, #tpu.memory_space<vmem>>, vector<1x32xf32>
    %367 = vector.broadcast %366 : vector<1x32xf32> to vector<8x32xf32>
    %368 = arith.addf %365, %367 : vector<8x32xf32>
    %369 = arith.addf %368, %0 : vector<8x32xf32>
    %c0_135 = arith.constant 0 : index
    %c0_136 = arith.constant 0 : index
    %370 = vector.load %arg19[%c0_135, %c0_136] : memref<8x32xf32, #tpu.memory_space<vmem>>, vector<8x32xf32>
    tpu.vector_store %arg19[%c0_135, %c0_136], %369 {strides = array<i32>} : memref<8x32xf32, #tpu.memory_space<vmem>>, vector<8x32xf32>,
    return
  }
  func.func @transform_0(%arg0: i32) -> (i32, i32) {
    %c0_i32 = arith.constant 0 : i32
    %c0_i32_0 = arith.constant 0 : i32
    return %arg0, %c0_i32 : i32, i32
  }
  func.func @transform_1(%arg0: i32) -> (i32, i32) {
    %c0_i32 = arith.constant 0 : i32
    %c0_i32_0 = arith.constant 0 : i32
    %c0_i32_1 = arith.constant 0 : i32
    return %c0_i32, %c0_i32_0 : i32, i32
  }
  func.func @transform_2(%arg0: i32) -> (i32, i32) {
    %c0_i32 = arith.constant 0 : i32
    %c0_i32_0 = arith.constant 0 : i32
    %c0_i32_1 = arith.constant 0 : i32
    return %c0_i32, %c0_i32_0 : i32, i32
  }
  func.func @transform_3(%arg0: i32) -> (i32, i32) {
    %c0_i32 = arith.constant 0 : i32
    %c0_i32_0 = arith.constant 0 : i32
    return %arg0, %c0_i32 : i32, i32
  }
  func.func @transform_4(%arg0: i32) -> (i32, i32) {
    %c0_i32 = arith.constant 0 : i32
    %c0_i32_0 = arith.constant 0 : i32
    return %arg0, %c0_i32 : i32, i32
  }
  func.func @transform_5(%arg0: i32) -> (i32, i32) {
    %c0_i32 = arith.constant 0 : i32
    %c0_i32_0 = arith.constant 0 : i32
    %c0_i32_1 = arith.constant 0 : i32
    return %c0_i32, %c0_i32_0 : i32, i32
  }
  func.func @transform_6(%arg0: i32) -> (i32, i32) {
    %c0_i32 = arith.constant 0 : i32
    %c0_i32_0 = arith.constant 0 : i32
    %c0_i32_1 = arith.constant 0 : i32
    return %c0_i32, %c0_i32_0 : i32, i32
  }
  func.func @transform_7(%arg0: i32) -> (i32, i32) {
    %c0_i32 = arith.constant 0 : i32
    %c0_i32_0 = arith.constant 0 : i32
    %c0_i32_1 = arith.constant 0 : i32
    return %c0_i32, %c0_i32_0 : i32, i32
  }
  func.func @transform_8(%arg0: i32) -> (i32, i32) {
    %c0_i32 = arith.constant 0 : i32
    %c0_i32_0 = arith.constant 0 : i32
    %c0_i32_1 = arith.constant 0 : i32
    return %c0_i32, %c0_i32_0 : i32, i32
  }
  func.func @transform_9(%arg0: i32) -> (i32, i32) {
    %c0_i32 = arith.constant 0 : i32
    %c0_i32_0 = arith.constant 0 : i32
    %c0_i32_1 = arith.constant 0 : i32
    return %c0_i32, %c0_i32_0 : i32, i32
  }
  func.func @transform_10(%arg0: i32) -> (i32, i32) {
    %c0_i32 = arith.constant 0 : i32
    %c0_i32_0 = arith.constant 0 : i32
    %c0_i32_1 = arith.constant 0 : i32
    return %c0_i32, %c0_i32_0 : i32, i32
  }
  func.func @transform_11(%arg0: i32) -> (i32, i32) {
    %c0_i32 = arith.constant 0 : i32
    %c0_i32_0 = arith.constant 0 : i32
    %c0_i32_1 = arith.constant 0 : i32
    return %c0_i32, %c0_i32_0 : i32, i32
  }
  func.func @transform_12(%arg0: i32) -> (i32, i32) {
    %c0_i32 = arith.constant 0 : i32
    %c0_i32_0 = arith.constant 0 : i32
    %c0_i32_1 = arith.constant 0 : i32
    return %c0_i32, %c0_i32_0 : i32, i32
  }
  func.func @transform_13(%arg0: i32) -> (i32, i32) {
    %c0_i32 = arith.constant 0 : i32
    %c0_i32_0 = arith.constant 0 : i32
    %c0_i32_1 = arith.constant 0 : i32
    return %c0_i32, %c0_i32_0 : i32, i32
  }
  func.func @transform_14(%arg0: i32) -> (i32, i32) {
    %c0_i32 = arith.constant 0 : i32
    %c0_i32_0 = arith.constant 0 : i32
    %c0_i32_1 = arith.constant 0 : i32
    return %c0_i32, %c0_i32_0 : i32, i32
  }
  func.func @transform_15(%arg0: i32) -> (i32, i32) {
    %c0_i32 = arith.constant 0 : i32
    %c0_i32_0 = arith.constant 0 : i32
    %c0_i32_1 = arith.constant 0 : i32
    return %c0_i32, %c0_i32_0 : i32, i32
  }
  func.func @transform_16(%arg0: i32) -> (i32, i32) {
    %c0_i32 = arith.constant 0 : i32
    %c0_i32_0 = arith.constant 0 : i32
    %c0_i32_1 = arith.constant 0 : i32
    return %c0_i32, %c0_i32_0 : i32, i32
  }
  func.func @transform_17(%arg0: i32) -> (i32, i32) {
    %c0_i32 = arith.constant 0 : i32
    %c0_i32_0 = arith.constant 0 : i32
    %c0_i32_1 = arith.constant 0 : i32
    return %c0_i32, %c0_i32_0 : i32, i32
  }
  func.func @transform_18(%arg0: i32) -> (i32, i32) {
    %c0_i32 = arith.constant 0 : i32
    %c0_i32_0 = arith.constant 0 : i32
    return %arg0, %c0_i32 : i32, i32
  }
}

</mosaic_0001>

<bundles_post_ra>
// kernel: sectionnet_forward.1
= control target key start
LH: loop header
LB: loop body
LE: loop exit
PB: predicated region body
PF: predicated region fallthrough
CT: control target
= control target key end

     0   :  { %s3406_s0 = inlined_call_operand.vmem [shape: f32[16,32], index: 0, kind: input, shape index: {}, may-alias: {0,1}]   ;;  %s3407_s1 = inlined_call_operand.vmem [shape: f32[16,32], index: 1, kind: input, shape index: {}, may-alias: {0,1}]   ;;  %s3408_s2 = inlined_call_operand.vmem [shape: f32[24,64], index: 2, kind: input, shape index: {}]   ;;  %s3409_s3 = inlined_call_operand.vmem [shape: bf16[16,24], index: 3, kind: input, shape index: {}]   ;;  %s3410_s4 = inlined_call_operand.vmem [shape: bf16[16,16], index: 4, kind: input, shape index: {}]   ;;  %s3411_s5 = inlined_call_operand.vmem [shape: bf16[64,128], index: 5, kind: input, shape index: {}]   ;;  %s3412_s6 = inlined_call_operand.vmem [shape: bf16[4,64], index: 6, kind: input, shape index: {}]   ;;  %s3413_s7 = inlined_call_operand.vmem [shape: bf16[32,128], index: 7, kind: input, shape index: {}]   ;;  %s3414_s8 = inlined_call_operand.vmem [shape: bf16[4,32], index: 8, kind: input, shape index: {}]   ;;  %s3415_s9 = inlined_call_operand.vmem [shape: bf16[32,8], index: 9, kind: input, shape index: {}]   ;;  %s3416_s10 = inlined_call_operand.vmem [shape: f32[1,128], index: 10, kind: input, shape index: {}]   ;;  %s3417_s11 = inlined_call_operand.vmem [shape: f32[1,128], index: 11, kind: input, shape index: {}]   ;;  %s3418_s12 = inlined_call_operand.vmem [shape: bf16[256,128], index: 12, kind: input, shape index: {}]   ;;  %s3419_s13 = inlined_call_operand.vmem [shape: f32[1,128], index: 13, kind: input, shape index: {}]   ;;  %s3420_s14 = inlined_call_operand.vmem [shape: bf16[128,256], index: 14, kind: input, shape index: {}]   ;;  %s3421_s15 = inlined_call_operand.vmem [shape: f32[1,256], index: 15, kind: input, shape index: {}]   ;;  %s3422_s16 = inlined_call_operand.vmem [shape: bf16[256,32], index: 16, kind: input, shape index: {}]   ;;  %s3423_s17 = inlined_call_operand.vmem [shape: f32[1,32], index: 17, kind: input, shape index: {}]   ;;  %s3424_s18 = inlined_call_operand.hbm [shape: f32[16,32], index: 18, kind: output, shape index: {}]  }
   0x1   :  { %3432 = sst [smem:[#allocation8_spill]] %s3406_s0 }
   0x2   :  { %3433 = sst [smem:[#allocation9_spill]] %s3407_s1 }
   0x3   :  { %3434 = sst [smem:[#allocation10_spill]] %s3408_s2 }
   0x4   :  { %3435 = sst [smem:[#allocation11_spill]] %s3411_s5 }
   0x5   :  { %3436 = sst [smem:[#allocation12_spill]] %s3412_s6 }
   0x6   :  { %3437 = sst [smem:[#allocation13_spill]] %s3413_s7 }
   0x7   :  { %23 = vsyncpa [#allocation3], 0 }
   0x8   :  { %25 = vsyncpa [#allocation3 + $0x1], 0  ;;  %s2812_s27 = smov 0   ;;  %s2814_s28 = smov 0  }
   0x9   :  { %s2816_s29 = smov 0   ;;  %s2818_s30 = smov 0  }
   0xa LB: > { %3438 = sst [smem:[#allocation5_spill]] %s2700_s29  ;;  %s2833_s0 = sadd.s32 4294967295, %s2704_s30   ;;  %s2704_s30 = sphi %s2818_s30, %s3461_s30   ;;  %s2700_s29 = sphi %s2816_s29, %s3463_s29   ;;  %s2696_s28 = sphi %s2814_s28, %s3465_s28   ;;  %s2692_s27 = sphi %s2812_s27, %s3464_s27  }
   0xb   : > { %s2188_s19 = sadd.s32 4294967294, %s2704_s30   ;;  %s2837_s1 = sadd.s32 1, %s2704_s30  }
   0xc   : > { %3439 = sst [smem:[#allocation6_spill]] %s2837_s1  ;;  %s431_s20 = sadd.s32 1, %s2700_s29 }
   0xd   : > { %s428_s21 = ssub.s32 %s2704_s30, %s2837_s1  ;;  %p441_p0 = scmp.ne.s32.totalorder %s2700_s29, %s2696_s28 }
   0xe   : > { %p429_p1 = scmp.eq.s32.totalorder %s428_s21, 0  ;;  %p442_p2 = scmp.eq.s32.totalorder %s2833_s0, 1 }
   0xf   : > { %p447_p3 = scmp.ne.s32.totalorder %s2696_s28, %s2692_s27  ;;  %p448_p4 = scmp.eq.s32.totalorder %s2188_s19, 1 }
  0x10   : > { %s2848_s22 = scalar_select %p429_p1, %s2700_s29, %s431_s20  }
  0x11   : > { %p2850_p5 = por %p442_p2, %p441_p0  ;;  %p2854_p6 = por %p448_p4, %p447_p3 }
  0x12   : > { %3440 = sst [smem:[#allocation7_spill]] %s2848_s22  ;;  %p2191_p7 = scmp.ge.s32.totalorder %s2704_s30, 1 }
  0x13   : > { %p532_p8 = scmp.lt.s32.totalorder %s2704_s30, 3 }
  0x15   : > { %p533_p9 = pnand %p2191_p7, %p532_p8 }
  0x16   : > { %s3443_s5 = sld [smem:[#allocation11_spill]] (!%p533_p9)  ;;  %v2706_v2 = vmov (!%p533_p9), 0.0   ;;  %vm2707_vm0 = vmmov (!%p533_p9), 0   ;;  %s3444_s22 = sld [smem:[#allocation10_spill]] (!%p533_p9)  ;;  %vm654_vm1 = vcmask (!%p533_p9), 523264   ;;  %vm725_vm2 = vcmask (!%p533_p9), 261120  }
  0x17   : > { %536 = sbr.rel (%p533_p9) target bundleno = 1706 (0x6aa), region = 92  ;;  %2401 = vmatprep.subr.bf16.mxu1 (!%p533_p9), %v2706_v2  ;;  %2405 = vmatprep.mubr.msk.bf16.mxu1 (!%p533_p9), %vm2707_vm0, %v2706_v2  ;;  %p593_p10 = scmp.lt.s32.totalorder (!%p533_p9), %s2833_s0, 1  ;;  %v814_v19 = vld [vmem:[%s3414_s8] sm:$0x3] (!%p533_p9)  ;;  %v2544_v21 = vld [vmem:[%s3415_s9 + $0x8] sm:$0xff] (!%p533_p9)   ;;  %v2708_v24 = vmov (!%p533_p9), 6   ;;  %v917_v26 = vlaneseq (!%p533_p9) }
  0x18   : > { %s3445_s7 = sld [smem:[#allocation13_spill]] (!%p533_p9)  ;;  %s3446_s20 = sld [smem:[#allocation9_spill]] (!%p533_p9)  ;;  %v2543_v20 = vld [vmem:[%s3415_s9] sm:$0xff] (!%p533_p9)   ;;  %2530 = vset.pattern.permute.xlu1 (!%p533_p9), %v2708_v24  ;;  %v2709_v25 = vmov (!%p533_p9), 5   ;;  %vm997_vm11 = vcmask (!%p533_p9), 1043456  }
  0x19   : > { %s3447_s6 = sld [smem:[#allocation12_spill]] (!%p533_p9)  ;;  %2528 = vset.pattern.permute.xlu0 (!%p533_p9), %v2709_v25  ;;  %v2948_v27 = vand.u32 (!%p533_p9), 127, %v917_v26  ;;  %v2964_v31 = vshrl.u32 (!%p533_p9), %v917_v26, 7  ;;  %s2297_s26 = sshll.u32 (!%p533_p9), %s2833_s0, 7 }
  0x1a   : > { %s3363_s1 = scalar_lea.hbm (!%p533_p9), %s3424_s18, %s2297_s26 }
  0x1b   : > { %vm1113_vm3 = vcmp.ge.s32.totalorder (!%p533_p9), %v2948_v27, 64  ;;  %vm1114_vm4 = vcmp.lt.s32.totalorder (!%p533_p9), %v2948_v27, 96  ;;  %vm985_vm5 = vcmp.ge.s32.totalorder (!%p533_p9), %v2948_v27, 32  ;;  %vm986_vm6 = vcmp.lt.s32.totalorder (!%p533_p9), %v2948_v27, 64 }
  0x1c   : > { %v2537_v0 = vld [vmem:[%s3443_s5] sm:$0xff] (!%p533_p9)   ;;  %v2538_v1 = vld [vmem:[%s3443_s5 + $0x8] sm:$0xff] (!%p533_p9)   ;;  %v2539_v3 = vld [vmem:[%s3443_s5 + $0x10] sm:$0xff] (!%p533_p9)   ;;  %vm1195_vm8 = vcmp.ge.s32.totalorder (!%p533_p9), %v2948_v27, 96  ;;  %vm951_vm10 = vcmp.lt.s32.totalorder (!%p533_p9), %v2948_v27, 32  ;;  %v1093_v43 = vsub.s32 (!%p533_p9), 2, %v2964_v31 }
  0x1d   : > { %2381 = vmatprep.subr.bf16.mxu0 (!%p533_p9), %v2537_v0  ;;  %v613_v4 = vld [vmem:[%s3444_s22] sm:$0xff] (!%p533_p9)  ;;  %v614_v5 = vld [vmem:[%s3444_s22 + $0x8] sm:$0xff] (!%p533_p9)  ;;  %v615_v7 = vld [vmem:[%s3444_s22 + $0x10] sm:$0xff] (!%p533_p9)  ;;  %v1175_v60 = vsub.s32 (!%p533_p9), 3, %v2964_v31  ;;  %v3037_v26 = vsub.s32 (!%p533_p9), 0, %v2964_v31  ;;  %s590_s22 = sand.u32 (!%p533_p9), 1, %s2696_s28  }
  0x1e   : > { %2382 = vmatpush3.bf16.msra.mxu0 %v2537_v0  ;;  %v616_v6 = vpack.c.bf16 %v614_v5, %v613_v4  ;;  %v2540_v9 = vld [vmem:[%s3443_s5 + $0x18] sm:$0xff]   ;;  %v617_v10 = vpack.c.bf16 %v615_v7, %v615_v7  ;;  %v2541_v12 = vld [vmem:[%s3445_s7] sm:$0xff]   ;;  %v2542_v13 = vld [vmem:[%s3445_s7 + $0x8] sm:$0xff]   ;;  %s2913_s24 = scalar_select %p593_p10, %s2833_s0, 1 }
  0x1f   : > { %2383 = vmatprep.subr.bf16.mxu0 %v2538_v1  ;;  %v610_v14 = vld [vmem:[%s3446_s20] sm:$0xff]  ;;  %v611_v15 = vld [vmem:[%s3446_s20 + $0x8] sm:$0xff]  ;;  %vm2954_vm7 = vmand %vm1113_vm3, %vm1114_vm4  ;;  %s2192_s20 = sshll.u32 %s590_s22, 3 }
  0x20   : > { %2389 = vmatprep.mubr.msk.bf16.mxu0 %vm654_vm1, %v616_v6  ;;  %v656_v8 = vsel %vm654_vm1, %v616_v6, 0  ;;  %v659_v11 = vsel %vm654_vm1, %v617_v10, 0  ;;  %v770_v16 = vld [vmem:[%s3447_s6] sm:$0x3]  ;;  %v612_v17 = vpack.c.bf16 %v611_v15, %v610_v14  ;;  %s2193_s5 = sshll.u32 %s2913_s24, 3  ;;  %s3448_s6 = sld [smem:[#allocation8_spill]]  ;;  %vm2959_vm9 = vmand %vm985_vm5, %vm986_vm6 }
  0x21   : > { %2402 = vmatpush3.bf16.xpose.msra.mxu1 %v656_v8  ;;  %vm2210_vm12 = vmpackc.low %vm2959_vm9, %vm2959_vm9  ;;  %v2715_v14 = vmov 3   ;;  %vm936_vm5 = vcmask 195584  }
  0x22   : > { %2384 = vmatpush3.bf16.msra.mxu0 %v2538_v1  ;;  %2403 = vmatprep.subr.bf16.mxu1 %v2706_v2  ;;  %v727_v18 = vsel %vm725_vm2, %v612_v17, 0  ;;  %vm2975_vm13 = vmpackc.low %vm951_vm10, %vm951_vm10 }
  0x23   : > { %2385 = vmatprep.subr.bf16.mxu0 %v2539_v3 }
  0x26   : > { %2386 = vmatpush3.bf16.msra.mxu0 %v2539_v3  ;;  %s2934_s7 = scalar_lea.vmem %s3448_s6, %s2193_s5  ;;  %s2194_s6 = sshll.u32 %s2913_s24, 2 }
  0x27   : > { %2387 = vmatprep.subr.bf16.mxu0 %v2540_v9  ;;  %v608_v22 = vld [vmem:[%s2934_s7] sm:$0xff]  ;;  %s600_s5 = scalar_lea.vmem %s3409_s3, %s2194_s6  ;;  %s604_s19 = scalar_lea.vmem %s3410_s4, %s2194_s6 }
  0x28   : > { %v609_v23 = vpack.c.bf16 %v608_v22, %v608_v22  ;;  %v618_v15 = vld [vmem:[%s600_s5] sm:$0xf]  ;;  %s2092_s6 = scalar_lea.sflag [#allocation3], %s590_s22 }
  0x29   : > { %2404 = vmatpush3.bf16.xpose.msra.mxu1 %v659_v11  ;;  %v2712_v11 = vmov 1   ;;  %vm619_vm14 = vcmp.gt.bf16.partialorder %v618_v15, 0 }
  0x2a   : > { %2388 = vmatpush3.bf16.msra.mxu0 %v2540_v9  ;;  %2423 = vmatprep.subr.bf16.mxu1 %v2706_v2  ;;  %v2710_v9 = vmov 7  }
  0x2b   : > { %2393 = vmatprep.subr.bf16.mxu0 %v2706_v2 }
  0x2d   : > { %2390 = vmatmul.mubr.msk.bf16.vlgmr.msra.gmra.mrb[0].mxu0 %vm654_vm1, %v617_v10  ;;  %v2711_v10 = vmov 4  }
  0x2e   : > { %2394 = vmatpush3.bf16.msra.mxu0 %v2541_v12  ;;  %2397 = vmatprep.mubr.msk.bf16.mxu0 %vm2707_vm0, %v2706_v2  ;;  %v2713_v12 = vmov 0  }
  0x2f   : > { %2395 = vmatprep.subr.bf16.mxu0 %v2706_v2 }
  0x30   : > { %2406 = vmatmul.mubr.msk.bf16.vlgmr.msra.gmra.mrb[0].mxu1 %vm654_vm1, %v770_v16  ;;  %v932_v16 = vsel %vm619_vm14, 65537, %v2713_v12 }
  0x31   : > { %2427 = vmatprep.mubr.msk.bf16.mxu1 %vm2707_vm0, %v2706_v2 }
  0x32   : > { %2396 = vmatpush3.bf16.msra.mxu0 %v2542_v13  ;;  %v2714_v13 = vmov 2  }
  0x33   : > { %2409 = vmatprep.subr.bf16.mxu0 %v2706_v2 }
  0x35   : > { %2398 = vmatmul.mubr.msk.bf16.vlgmr.msra.gmra.mrb[4].mxu0 %vm725_vm2, %v612_v17  ;;  %v3028_v17 = vsub.s32 1, %v2964_v31 }
  0x36   : > { %2411 = vmatprep.mubr.msk.bf16.mxu0 %vm2707_vm0, %v2706_v2 }
  0x3b   : > { %2410 = vmatpush3.bf16.xpose.msra.mxu0 %v727_v18 }
  0x3c   : > { %2415 = vmatprep.subr.bf16.mxu0 %v2706_v2 }
  0x42   : > { %2412 = vmatmul.mubr.msk.bf16.vlgmr.msra.gmra.mrb[8].mxu0 %vm725_vm2, %v814_v19  ;;  %v620_v19 = vld [vmem:[%s604_s19] sm:$0xf]  ;;  %s592_s19 = scalar_lea.vmem [#allocation2], %s2192_s20 }
  0x43   : > { %2416 = vmatpush3.bf16.msra.mxu0 %v2543_v20  ;;  %2419 = vmatprep.mubr.msk.bf16.mxu0 %vm2707_vm0, %v2706_v2  ;;  %v933_v20 = vunpack.c.l.b16 %v932_v16  ;;  %vm621_vm15 = vcmp.gt.bf16.partialorder %v620_v19, 0  ;;  %s2105_s24 = sshll.u32 %s592_s19, 4  ;;  %s3365_s24 = int_to_ptr.vmem [resolvable:$true] %s2105_s24 }
  0x44   : > { %2417 = vmatprep.subr.bf16.mxu0 %v2706_v2  ;;  %s2642_s5 = scalar_lea.vmem %s3365_s24, 128 }
  0x45   : > { %vm3032_vm1 = vcmp.ne.s32.totalorder %v933_v20, 0  ;;  %p2643_p11 = scmp.ne.s32.totalorder %s3365_s24, %s2642_s5 }
  0x47   : > { %2418 = vmatpush3.bf16.msra.mxu0 %v2544_v21  ;;  %p2644_p12 = pnand %p2643_p11, %p2850_p5 }
  0x48   : > { %2431 = vmatprep.subr.bf16.mxu0 %v2706_v2 }
  0x49   : > { %p2645_p13 = pneg %p2644_p12 }
  0x4a   : > { %2420 = vmatmul.mubr.msk.bf16.vlgmr.msra.gmra.mrb[12].mxu0 %vm725_vm2, %v609_v23 }
  0x4b   : > { %2435 = vmatprep.mubr.msk.bf16.mxu0 %vm2707_vm0, %v2706_v2 }
 0x100   : > { %v2391_v30 = vpop.f32.mrb[0].mxu0 }
 0x101   : > { %v695_v32 = vpop.f32.mrb[1].mxu0  ;;  %v1118_v33 = vsel %vm2954_vm7, %v2391_v30, 0.0  ;;  %v1200_v34 = vsel %vm1195_vm8, %v2391_v30, 0.0  ;;  %v990_v36 = vsel %vm2959_vm9, %v2391_v30, 0.0  ;;  %v955_v37 = vsel %vm951_vm10, %v2391_v30, 0.0 }
 0x102   : > { %v2392_v35 = vpop.f32.mrb[2].mxu0  ;;  %v1121_v38 = vpack.c.bf16 %v1118_v33, %v1118_v33  ;;  %v1203_v39 = vpack.c.bf16 %v1200_v34, %v1200_v34  ;;  %v993_v45 = vpack.c.bf16 %v990_v36, %v990_v36  ;;  %v958_v46 = vpack.c.bf16 %v955_v37, %v955_v37 }
 0x103   : > { %v698_v40 = vpop.f32.mrb[3].mxu0  ;;  %v2985_v47 = vpop.f32.mrb[0].mxu1  ;;  %v1276_v33 = vsel %vm621_vm15, 65537, %v2713_v12 }
 0x104   : > { %v2979_v42 = vpack.c.bf16 %v698_v40, %v695_v32  ;;  %v2983_v44 = vsel %vm997_vm11, %v1121_v38, 0  ;;  %v2988_v48 = vsel %vm997_vm11, %v1203_v39, 0  ;;  %v2407_v49 = vpop.f32.mrb[1].mxu1  ;;  %v1094_v50 = vrot.slane %v2985_v47, %v1093_v43 }
 0x105   : > { %v811_v51 = vpop.f32.mrb[2].mxu1  ;;  %v999_v54 = vsel %vm997_vm11, %v993_v45, 0  ;;  %v1045_v55 = vsel %vm997_vm11, %v958_v46, 0  ;;  %v1176_v7 = vrot.slane %v2985_v47, %v1175_v60  ;;  %v966_v18 = vrot.slane %v2985_v47, %v3028_v17 }
 0x106   : > { %2424 = vmatpush3.bf16.msk.msra.mxu1 %vm2210_vm12, %v2979_v42  ;;  %2432 = vmatpush3.bf16.msk.msra.mxu0 %vm2975_vm13, %v2979_v42  ;;  %v2408_v53 = vpop.f32.mrb[3].mxu1  ;;  %v927_v34 = vrot.slane %v2985_v47, %v3037_v26 }
 0x107   : > { %2425 = vmatprep.subr.bf16.mxu1 %v2706_v2  ;;  %2433 = vmatprep.subr.bf16.mxu0 %v2706_v2 }
 0x108   : > { %v763_v52 = vpop.f32.mrb[4].mxu0 }
 0x109   : > { %v2399_v56 = vpop.f32.mrb[5].mxu0 }
 0x10a   : > { %2426 = vmatpush3.bf16.msra.mxu1 %v999_v54  ;;  %2434 = vmatpush3.bf16.msra.mxu0 %v1045_v55  ;;  %v766_v57 = vpop.f32.mrb[6].mxu0 }
 0x10b   : > { %v3004_v58 = vpack.c.bf16 %v766_v57, %v763_v52  ;;  %v2400_v59 = vpop.f32.mrb[7].mxu0  ;;  %2439 = vmatprep.subr.bf16.mxu1 %v2706_v2  ;;  %2447 = vmatprep.subr.bf16.mxu0 %v2706_v2 }
 0x115   : > { %v3009_v61 = vpop.f32.mrb[8].mxu0 }
 0x116   : > { %v2413_v62 = vpop.f32.mrb[9].mxu0  ;;  %v3012_v63 = vrot.slane %v3009_v61, %v1093_v43  ;;  %v3015_v0 = vrot.slane %v3009_v61, %v1175_v60  ;;  %v1277_v43 = vunpack.c.l.b16 %v1276_v33  ;;  %v1305_v47 = vrot.slane %v3009_v61, %v3028_v17 }
 0x117   : > { %v855_v1 = vpop.f32.mrb[10].mxu0  ;;  %v1271_v51 = vrot.slane %v3009_v61, %v3037_v26 }
 0x118   : > { %v2414_v3 = vpop.f32.mrb[11].mxu0  ;;  %vm3054_vm11 = vcmp.ne.s32.totalorder %v1277_v43, 0 }
 0x11d   : > { %v911_v4 = vpop.f32.mrb[12].mxu0 }
 0x11e   : > { %1088 = vperm.xlu1 %2530, %v911_v4   ;;  %960 = vperm.xlu0 %2528, %v911_v4   ;;  %v2421_v5 = vpop.f32.mrb[13].mxu0 }
 0x11f   : > { %v914_v6 = vpop.f32.mrb[14].mxu0 }
 0x120   : > { %v2422_v8 = vpop.f32.mrb[15].mxu0 }
 0x122   : > { %2531 = vset.pattern.permute.xlu1 %v2710_v9  ;;  %2529 = vset.pattern.permute.xlu0 %v2711_v10 }
 0x123   : > { %1170 = vperm.xlu1 %2531, %v911_v4   ;;  %921 = vperm.xlu0 %2529, %v911_v4  }
 0x127   : > { %2532 = vset.pattern.permute.xlu1 %v2712_v11  ;;  %2533 = vset.pattern.permute.xlu0 %v2713_v12 }
 0x128   : > { %1299 = vperm.xlu1 %2532, %v911_v4   ;;  %1265 = vperm.xlu0 %2533, %v911_v4  }
 0x12c   : > { %2534 = vset.pattern.permute.xlu1 %v2714_v13  ;;  %2536 = vset.pattern.permute.xlu0 %v2715_v14 }
 0x12d   : > { %1415 = vperm.xlu1 %2534, %v911_v4  }
 0x131   : > { %2535 = vset.pattern.permute.xlu1 %v2715_v14 }
 0x132   : > { %1489 = vperm.xlu1 %2535, %v911_v4  }
 0x19d   : > { %v1089_v21 = vpop.permute.xlu1 %1088  ;;  %v961_v22 = vpop.permute.xlu0 %960 }
 0x19e   : > { %v1095_v23 = vadd.f32 %v1094_v50, %v1089_v21  ;;  %v967_v24 = vadd.f32 %v966_v18, %v961_v22 }
 0x1a0   : > { %v1097_v30 = vmul.f32 0.2, %v1095_v23  ;;  %v969_v32 = vmul.f32 0.2, %v967_v24  ;;  %vm968_vm3 = vcmp.gt.f32.partialorder %v967_v24, 0.0  ;;  %vm1096_vm4 = vcmp.gt.f32.partialorder %v1095_v23, 0.0 }
 0x1a2   : > { %v1171_v35 = vpop.permute.xlu1 %1170  ;;  %v922_v36 = vpop.permute.xlu0 %921  ;;  %v970_v37 = vsel %vm968_vm3, %v967_v24, %v969_v32  ;;  %v1098_v38 = vsel %vm1096_vm4, %v1095_v23, %v1097_v30  ;;  %vm1280_vm3 = vcmask 130048  }
 0x1a3   : > { %v1177_v39 = vadd.f32 %v1176_v7, %v1171_v35  ;;  %v928_v40 = vadd.f32 %v927_v34, %v922_v36  ;;  %v971_v31 = vsel %vm3032_vm1, %v970_v37, -1e+30  ;;  %v1099_v46 = vsel %vm3032_vm1, %v1098_v38, -1e+30 }
 0x1a4   : > { %v972_v45 = vsel %vm936_vm5, %v971_v31, -inf  ;;  %v1100_v59 = vsel %vm936_vm5, %v1099_v46, -inf }
 0x1a5   : > { %v1179_v49 = vmul.f32 0.2, %v1177_v39  ;;  %v930_v50 = vmul.f32 0.2, %v928_v40  ;;  %973 = vmax.xlane.f32.xlu0 %v972_v45  ;;  %vm929_vm6 = vcmp.gt.f32.partialorder %v928_v40, 0.0  ;;  %vm1178_vm10 = vcmp.gt.f32.partialorder %v1177_v39, 0.0 }
 0x1a7   : > { %v1300_v52 = vpop.permute.xlu1 %1299  ;;  %v1266_v53 = vpop.permute.xlu0 %1265  ;;  %v931_v54 = vsel %vm929_vm6, %v928_v40, %v930_v50  ;;  %v1180_v55 = vsel %vm1178_vm10, %v1177_v39, %v1179_v49  ;;  %vm3131_vm10 = vmpackc.low %vm1195_vm8, %vm1195_vm8 }
 0x1a8   : > { %v1306_v56 = vadd.f32 %v1305_v47, %v1300_v52  ;;  %v1272_v57 = vadd.f32 %v1271_v51, %v1266_v53  ;;  %v935_v60 = vsel %vm3032_vm1, %v931_v54, -1e+30  ;;  %v1181_v61 = vsel %vm3032_vm1, %v1180_v55, -1e+30 }
 0x1a9   : > { %1101 = vmax.xlane.f32.xlu0 %v1100_v59  ;;  %v937_v1 = vsel %vm936_vm5, %v935_v60, -inf  ;;  %v1182_v6 = vsel %vm936_vm5, %v1181_v61, -inf }
 0x1aa   : > { %v1308_v3 = vmul.f32 0.2, %v1306_v56  ;;  %v1274_v4 = vmul.f32 0.2, %v1272_v57  ;;  %938 = vmax.xlane.f32.xlu1 %v937_v1  ;;  %vm1307_vm14 = vcmp.gt.f32.partialorder %v1306_v56, 0.0  ;;  %vm1273_vm15 = vcmp.gt.f32.partialorder %v1272_v57, 0.0 }
 0x1ac   : > { %v1416_v5 = vpop.permute.xlu1 %1415  ;;  %v1309_v7 = vsel %vm1307_vm14, %v1306_v56, %v1308_v3  ;;  %v1275_v8 = vsel %vm1273_vm15, %v1272_v57, %v1274_v4 }
 0x1ad   : > { %v1422_v9 = vadd.f32 %v3012_v63, %v1416_v5  ;;  %1183 = vmax.xlane.f32.xlu0 %v1182_v6  ;;  %v1310_v10 = vsel %vm3054_vm11, %v1309_v7, -1e+30  ;;  %v1279_v11 = vsel %vm3054_vm11, %v1275_v8, -1e+30 }
 0x1ae   : > { %v1311_v13 = vsel %vm1280_vm3, %v1310_v10, -inf  ;;  %v1281_v15 = vsel %vm1280_vm3, %v1279_v11, -inf }
 0x1af   : > { %v1424_v14 = vmul.f32 0.2, %v1422_v9  ;;  %1312 = vmax.xlane.f32.xlu1 %v1311_v13  ;;  %vm1423_vm4 = vcmp.gt.f32.partialorder %v1422_v9, 0.0 }
 0x1b1   : > { %v1490_v16 = vpop.permute.xlu1 %1489  ;;  %1282 = vmax.xlane.f32.xlu0 %v1281_v15  ;;  %v1425_v18 = vsel %vm1423_vm4, %v1422_v9, %v1424_v14 }
 0x1b2   : > { %v1496_v19 = vadd.f32 %v3015_v0, %v1490_v16  ;;  %v1426_v63 = vsel %vm3054_vm11, %v1425_v18, -1e+30 }
 0x1b3   : > { %v1427_v20 = vsel %vm1280_vm3, %v1426_v63, -inf }
 0x1b4   : > { %v1498_v21 = vmul.f32 0.2, %v1496_v19  ;;  %1428 = vmax.xlane.f32.xlu1 %v1427_v20  ;;  %vm1497_vm6 = vcmp.gt.f32.partialorder %v1496_v19, 0.0 }
 0x1b6   : > { %v1499_v22 = vsel %vm1497_vm6, %v1496_v19, %v1498_v21 }
 0x1b7   : > { %v1500_v23 = vsel %vm3054_vm11, %v1499_v22, -1e+30 }
 0x1b8   : > { %v1501_v24 = vsel %vm1280_vm3, %v1500_v23, -inf }
 0x1b9   : > { %1502 = vmax.xlane.f32.xlu0 %v1501_v24 }
 0x232   : > { %v974_v30 = vpop.xlane.xlu0 %973 }
 0x233   : > { %v975_v32 = vsub.f32 %v971_v31, %v974_v30 }
 0x235   : > { %v976_v33 = vmul.f32 1.442695, %v975_v32 }
 0x236   : > { %v1102_v34 = vpop.xlane.xlu0 %1101 }
 0x237   : > { %2601 = vpow2.f32 %v976_v33  ;;  %v1103_v0 = vsub.f32 %v1099_v46, %v1102_v34  ;;  %v939_v35 = vpop.xlane.xlu1 %938 }
 0x238   : > { %v940_v36 = vsub.f32 %v935_v60, %v939_v35 }
 0x239   : > { %v1104_v37 = vmul.f32 1.442695, %v1103_v0 }
 0x23a   : > { %v941_v38 = vmul.f32 1.442695, %v940_v36  ;;  %v1184_v39 = vpop.xlane.xlu0 %1183 }
 0x23b   : > { %2603 = vpow2.f32 %v1104_v37  ;;  %v1185_v40 = vsub.f32 %v1181_v61, %v1184_v39 }
 0x23c   : > { %2605 = vpow2.f32 %v941_v38  ;;  %v1313_v43 = vpop.xlane.xlu1 %1312 }
 0x23d   : > { %v1186_v45 = vmul.f32 1.442695, %v1185_v40  ;;  %v1314_v49 = vsub.f32 %v1310_v10, %v1313_v43 }
 0x23e   : > { %v1283_v50 = vpop.xlane.xlu0 %1282 }
 0x23f   : > { %2607 = vpow2.f32 %v1186_v45  ;;  %v1315_v47 = vmul.f32 1.442695, %v1314_v49  ;;  %v1284_v51 = vsub.f32 %v1279_v11, %v1283_v50 }
 0x241   : > { %v2602_v31 = vpop.eup %2601  ;;  %2609 = vpow2.f32 %v1315_v47  ;;  %v1285_v52 = vmul.f32 1.442695, %v1284_v51  ;;  %v1429_v53 = vpop.xlane.xlu1 %1428 }
 0x242   : > { %v1430_v46 = vsub.f32 %v1426_v63, %v1429_v53  ;;  %v978_v54 = vsel %vm3032_vm1, %v2602_v31, 0.0 }
 0x243   : > { %2611 = vpow2.f32 %v1285_v52  ;;  %v979_v55 = vsel %vm936_vm5, %v978_v54, 0.0 }
 0x244   : > { %v1431_v56 = vmul.f32 1.442695, %v1430_v46  ;;  %980 = vadd.xlane.f32.xlu1 %v979_v55 }
 0x245   : > { %v2604_v57 = vpop.eup %2603 }
 0x246   : > { %v2606_v59 = vpop.eup %2605  ;;  %2613 = vpow2.f32 %v1431_v56  ;;  %v1503_v60 = vpop.xlane.xlu0 %1502  ;;  %v1106_v1 = vsel %vm3032_vm1, %v2604_v57, 0.0 }
 0x247   : > { %v1504_v61 = vsub.f32 %v1500_v23, %v1503_v60  ;;  %v1107_v3 = vsel %vm936_vm5, %v1106_v1, 0.0  ;;  %v943_v4 = vsel %vm3032_vm1, %v2606_v59, 0.0 }
 0x248   : > { %1108 = vadd.xlane.f32.xlu1 %v1107_v3  ;;  %v944_v5 = vsel %vm936_vm5, %v943_v4, 0.0 }
 0x249   : > { %v2608_v6 = vpop.eup %2607  ;;  %v1505_v7 = vmul.f32 1.442695, %v1504_v61  ;;  %945 = vadd.xlane.f32.xlu0 %v944_v5  ;;  %v2548_v5 = vld [vmem:[%s3418_s12 + $0x8] sm:$0xff]  }
 0x24a   : > { %v3087_v8 = vsel %vm3032_vm1, %v2608_v6, 0.0  ;;  %vm2218_vm1 = vmpackc.low %vm2954_vm7, %vm2954_vm7  ;;  %v2550_v6 = vld [vmem:[%s3418_s12 + $0x10] sm:$0xff]  }
 0x24b   : > { %v2610_v9 = vpop.eup %2609  ;;  %2615 = vpow2.f32 %v1505_v7  ;;  %v1189_v10 = vsel %vm936_vm5, %v3087_v8, 0.0  ;;  %v2551_v7 = vld [vmem:[%s3418_s12 + $0x58] sm:$0xff]  }
 0x24c   : > { %v3093_v11 = vsel %vm3054_vm11, %v2610_v9, 0.0  ;;  %v2553_v9 = vld [vmem:[%s3418_s12 + $0x60] sm:$0xff]  }
 0x24d   : > { %v2612_v13 = vpop.eup %2611  ;;  %1190 = vadd.xlane.f32.xlu0 %v1189_v10  ;;  %v1318_v14 = vsel %vm1280_vm3, %v3093_v11, 0.0  ;;  %v2554_v10 = vld [vmem:[%s3418_s12 + $0x20] sm:$0xff]  }
 0x24e   : > { %1319 = vadd.xlane.f32.xlu1 %v1318_v14  ;;  %v3099_v25 = vsel %vm3054_vm11, %v2612_v13, 0.0  ;;  %v2556_v13 = vld [vmem:[%s3418_s12 + $0x28] sm:$0xff]   ;;  %v2557_v14 = vld [vmem:[%s3418_s12 + $0x70] sm:$0xff]  }
 0x24f   : > { %v1288_v15 = vsel %vm1280_vm3, %v3099_v25, 0.0 }
 0x250   : > { %v2614_v16 = vpop.eup %2613 }
 0x251   : > { %1289 = vadd.xlane.f32.xlu0 %v1288_v15  ;;  %v3105_v18 = vsel %vm3054_vm11, %v2614_v16, 0.0  ;;  %v2559_v15 = vld [vmem:[%s3418_s12 + $0x78] sm:$0xff]  }
 0x252   : > { %v1434_v19 = vsel %vm1280_vm3, %v3105_v18, 0.0  ;;  %v2560_v16 = vld [vmem:[%s3418_s12 + $0x38] sm:$0xff]  }
 0x253   : > { %1435 = vadd.xlane.f32.xlu1 %v1434_v19 }
 0x255   : > { %v2616_v63 = vpop.eup %2615 }
 0x256   : > { %v3111_v20 = vsel %vm3054_vm11, %v2616_v63, 0.0 }
 0x257   : > { %v1508_v21 = vsel %vm1280_vm3, %v3111_v20, 0.0 }
 0x258   : > { %1509 = vadd.xlane.f32.xlu0 %v1508_v21 }
 0x2d1   : > { %v981_v22 = vpop.xlane.xlu1 %980 }
 0x2d2   : > { %v982_v23 = vadd.f32 1e-16, %v981_v22 }
 0x2d4   : > { %2617 = vrcp.f32 %v982_v23 }
 0x2d5   : > { %v1109_v24 = vpop.xlane.xlu1 %1108 }
 0x2d6   : > { %v1110_v30 = vadd.f32 1e-16, %v1109_v24  ;;  %v946_v32 = vpop.xlane.xlu0 %945 }
 0x2d7   : > { %v947_v33 = vadd.f32 1e-16, %v946_v32 }
 0x2d8   : > { %2619 = vrcp.f32 %v1110_v30 }
 0x2d9   : > { %2621 = vrcp.f32 %v947_v33 }
 0x2da   : > { %v1191_v34 = vpop.xlane.xlu0 %1190 }
 0x2db   : > { %v1192_v0 = vadd.f32 1e-16, %v1191_v34  ;;  %v1320_v35 = vpop.xlane.xlu1 %1319 }
 0x2dc   : > { %v1321_v36 = vadd.f32 1e-16, %v1320_v35 }
 0x2dd   : > { %2623 = vrcp.f32 %v1192_v0 }
 0x2de   : > { %v2618_v62 = vpop.eup %2617  ;;  %v1290_v37 = vpop.xlane.xlu0 %1289  ;;  %2625 = vrcp.f32 %v1321_v36 }
 0x2df   : > { %v984_v38 = vmul.f32 %v2618_v62, %v978_v54  ;;  %v1291_v39 = vadd.f32 1e-16, %v1290_v37  ;;  %v2226_v62 = vld [vmem:[%s3416_s10] ss:$0 sm:$0xff] }
 0x2e0   : > { %v1436_v40 = vpop.xlane.xlu1 %1435 }
 0x2e1   : > { %v991_v43 = vpack.c.bf16 %v984_v38, %v984_v38  ;;  %v1437_v47 = vadd.f32 1e-16, %v1436_v40  ;;  %2627 = vrcp.f32 %v1291_v39 }
 0x2e2   : > { %v2620_v45 = vpop.eup %2619 }
 0x2e3   : > { %v2622_v49 = vpop.eup %2621  ;;  %2428 = vmatmul.mubr.msk.bf16.vlgmr.msra.gmra.mrb[4].mxu1 %vm936_vm5, %v991_v43  ;;  %v1112_v51 = vmul.f32 %v2620_v45, %v1106_v1  ;;  %2629 = vrcp.f32 %v1437_v47 }
 0x2e4   : > { %v949_v50 = vmul.f32 %v2622_v49, %v943_v4  ;;  %2440 = vmatpush3.bf16.msk.msra.mxu1 %vm2218_vm1, %v2979_v42  ;;  %2443 = vmatprep.mubr.msk.bf16.mxu1 %vm2707_vm0, %v2706_v2  ;;  %v2545_v4 = vld [vmem:[%s3418_s12 + $0x40] sm:$0xff]  }
 0x2e5   : > { %2441 = vmatprep.subr.bf16.mxu1 %v2706_v2  ;;  %v1510_v31 = vpop.xlane.xlu0 %1509  ;;  %v1119_v55 = vpack.c.bf16 %v1112_v51, %v1112_v51 }
 0x2e6   : > { %v956_v52 = vpack.c.bf16 %v949_v50, %v949_v50  ;;  %v1511_v54 = vadd.f32 1e-16, %v1510_v31 }
 0x2e7   : > { %v2624_v46 = vpop.eup %2623 }
 0x2e8   : > { %2442 = vmatpush3.bf16.msra.mxu1 %v2983_v44  ;;  %2436 = vmatmul.mubr.msk.bf16.vlgmr.msra.gmra.mrb[16].mxu0 %vm936_vm5, %v956_v52  ;;  %v2626_v27 = vpop.eup %2625  ;;  %v1194_v56 = vmul.f32 %v2624_v46, %v3087_v8  ;;  %2631 = vrcp.f32 %v1511_v54  ;;  %v2552_v8 = vld [vmem:[%s3418_s12 + $0x18] sm:$0xff]  }
 0x2e9   : > { %2448 = vmatpush3.bf16.msk.msra.mxu0 %vm3131_vm10, %v2979_v42  ;;  %2455 = vmatprep.subr.bf16.mxu1 %v2706_v2  ;;  %v1323_v42 = vmul.f32 %v2626_v27, %v3093_v11  ;;  %v2555_v11 = vld [vmem:[%s3418_s12 + $0x68] sm:$0xff]  }
 0x2ea   : > { %2449 = vmatprep.subr.bf16.mxu0 %v2706_v2  ;;  %2451 = vmatprep.mubr.msk.bf16.mxu0 %vm2707_vm0, %v2706_v2  ;;  %v1201_v44 = vpack.c.bf16 %v1194_v56, %v1194_v56 }
 0x2eb   : > { %2444 = vmatmul.mubr.msk.bf16.vlgmr.msra.gmra.mrb[8].mxu1 %vm936_vm5, %v1119_v55  ;;  %v2628_v57 = vpop.eup %2627  ;;  %v1326_v29 = vpack.c.bf16 %v1323_v42, %v1323_v42 }
 0x2ec   : > { %2456 = vmatpush3.bf16.msk.msra.mxu1 %vm2210_vm12, %v3004_v58  ;;  %2457 = vmatprep.mubr.msk.bf16.mxu1 %vm2707_vm0, %v2706_v2  ;;  %v1293_v60 = vmul.f32 %v2628_v57, %v3099_v25  ;;  %v2558_v25 = vld [vmem:[%s3418_s12 + $0x30] sm:$0xff]  }
 0x2ed   : > { %2450 = vmatpush3.bf16.msra.mxu0 %v2988_v48  ;;  %2467 = vmatprep.subr.bf16.mxu1 %v2706_v2  ;;  %v2630_v59 = vpop.eup %2629 }
 0x2ee   : > { %2461 = vmatprep.subr.bf16.mxu0 %v2706_v2  ;;  %v1439_v41 = vmul.f32 %v2630_v59, %v3105_v18  ;;  %v1296_v48 = vpack.c.bf16 %v1293_v60, %v1293_v60 }
 0x2f0   : > { %2452 = vmatmul.mubr.msk.bf16.vlgmr.msra.gmra.mrb[20].mxu0 %vm936_vm5, %v1201_v44  ;;  %v1442_v61 = vpack.c.bf16 %v1439_v41, %v1439_v41 }
 0x2f1   : > { %2462 = vmatpush3.bf16.msk.msra.mxu0 %vm2975_vm13, %v3004_v58  ;;  %2463 = vmatprep.mubr.msk.bf16.mxu0 %vm2707_vm0, %v2706_v2 }
 0x2f2   : > { %2473 = vmatprep.subr.bf16.mxu0 %v2706_v2  ;;  %v2632_v1 = vpop.eup %2631 }
 0x2f3   : > { %2458 = vmatmul.mubr.msk.bf16.vlgmr.msra.gmra.mrb[12].mxu1 %vm1280_vm3, %v1326_v29  ;;  %v1513_v28 = vmul.f32 %v2632_v1, %v3111_v20  ;;  %v2244_v29 = vld [vmem:[%s3417_s11] ss:$0 sm:$0xff] }
 0x2f4   : > { %2468 = vmatpush3.bf16.msk.msra.mxu1 %vm2218_vm1, %v3004_v58  ;;  %2469 = vmatprep.mubr.msk.bf16.mxu1 %vm2707_vm0, %v2706_v2 }
 0x2f5   : > { %v1516_v3 = vpack.c.bf16 %v1513_v28, %v1513_v28  ;;  %2337 = vmatprep.subr.bf16.mxu1 %v2545_v4 }
 0x2f8   : > { %2464 = vmatmul.mubr.msk.bf16.vlgmr.msra.gmra.mrb[24].mxu0 %vm1280_vm3, %v1296_v48 }
 0x2f9   : > { %2474 = vmatpush3.bf16.msk.msra.mxu0 %vm3131_vm10, %v3004_v58  ;;  %2475 = vmatprep.mubr.msk.bf16.mxu0 %vm2707_vm0, %v2706_v2  ;;  %v2546_v58 = vld [vmem:[%s3418_s12] sm:$0xff]   ;;  %v2547_v2 = vld [vmem:[%s3418_s12 + $0x48] sm:$0xff]  }
 0x2fb   : > { %2470 = vmatmul.mubr.msk.bf16.vlgmr.msra.gmra.mrb[16].mxu1 %vm1280_vm3, %v1442_v61 }
 0x2fc   : > { %2338 = vmatpush3.bf16.msra.mxu1 %v2546_v58 }
 0x2fd   : > { %2339 = vmatprep.subr.bf16.mxu1 %v2547_v2 }
 0x300   : > { %2476 = vmatmul.mubr.msk.bf16.vlgmr.msra.gmra.mrb[28].mxu0 %vm1280_vm3, %v1516_v3  ;;  %2340 = vmatpush3.bf16.msra.mxu1 %v2548_v5 }
 0x301   : > { %1903 = vmatprep.mubr.bf16.mxu0 %v2713_v12  ;;  %v2549_v12 = vld [vmem:[%s3418_s12 + $0x50] sm:$0xff]  }
 0x302   : > { %2341 = vmatprep.subr.bf16.mxu1 %v2549_v12 }
 0x304   : > { %2342 = vmatpush3.bf16.msra.mxu1 %v2550_v6 }
 0x305   : > { %2343 = vmatprep.subr.bf16.mxu1 %v2551_v7  ;;  %v2563_v7 = vld [vmem:[%s3420_s14 + $0x4] ss:$8 sps:$4 sm:$0xff]  }
 0x306   : > { %1871 = vmatprep.subr.bf16.mxu0 %v2563_v7 }
 0x308   : > { %2344 = vmatpush3.bf16.msra.mxu1 %v2552_v8  ;;  %v2561_v8 = vld [vmem:[%s3420_s14] ss:$8 sps:$4 sm:$0xff]  }
 0x309   : > { %2345 = vmatprep.subr.bf16.mxu1 %v2553_v9  ;;  %1872 = vmatpush1.bf16.msra.mxu0 %v2561_v8  ;;  %v2566_v9 = vld [vmem:[%s3420_s14 + $0x14] ss:$8 sps:$4 sm:$0xff]  }
 0x30a   : > { %1873 = vmatprep.subr.bf16.mxu0 %v2566_v9 }
 0x30c   : > { %2346 = vmatpush3.bf16.msra.mxu1 %v2554_v10  ;;  %v2564_v10 = vld [vmem:[%s3420_s14 + $0x10] ss:$8 sps:$4 sm:$0xff]  }
 0x30d   : > { %2347 = vmatprep.subr.bf16.mxu1 %v2555_v11  ;;  %1874 = vmatpush1.bf16.msra.mxu0 %v2564_v10  ;;  %v2569_v11 = vld [vmem:[%s3420_s14 + $0x24] ss:$8 sps:$4 sm:$0xff]  }
 0x30e   : > { %1875 = vmatprep.subr.bf16.mxu0 %v2569_v11  ;;  %v2641_v10 = vld [vmem:[%s2934_s7] sm:$0xff]  ;;  %s2716_s7 = smov [#allocation2]  }
 0x30f   : > { %s2646_s0 = sshll.u32 %s2716_s7, 4  ;;  %s2647_s0 = int_to_ptr.vmem [resolvable:$false] %s2646_s0 }
 0x310   : > { %2348 = vmatpush3.bf16.msra.mxu1 %v2556_v13  ;;  %v2567_v13 = vld [vmem:[%s3420_s14 + $0x20] ss:$8 sps:$4 sm:$0xff]   ;;  %s2648_s20 = scalar_lea.vmem %s2647_s0, 256  ;;  %p2649_p0 = scmp.lt.s32.totalorder %s3365_s24, %s2647_s0 }
 0x311   : > { %2349 = vmatprep.subr.bf16.mxu1 %v2557_v14  ;;  %1876 = vmatpush1.bf16.msra.mxu0 %v2567_v13  ;;  %v2572_v14 = vld [vmem:[%s3420_s14 + $0x34] ss:$8 sps:$4 sm:$0xff]   ;;  %p2650_p1 = scmp.lt.s32.totalorder %s2648_s20, %s2642_s5 }
 0x312   : > { %1877 = vmatprep.subr.bf16.mxu0 %v2572_v14 }
 0x313   : > { %p2651_p2 = por %p2650_p1, %p2649_p0 }
 0x314   : > { %2350 = vmatpush3.bf16.msra.mxu1 %v2558_v25  ;;  %v2570_v25 = vld [vmem:[%s3420_s14 + $0x30] ss:$8 sps:$4 sm:$0xff]  }
 0x315   : > { %2351 = vmatprep.subr.bf16.mxu1 %v2559_v15  ;;  %v2575_v15 = vld [vmem:[%s3420_s14 + $0x44] ss:$8 sps:$4 sm:$0xff]   ;;  %1878 = vmatpush1.bf16.msra.mxu0 %v2570_v25  ;;  %p2652_p3 = pnand %p2651_p2, %p2645_p13 }
 0x316   : > { %1879 = vmatprep.subr.bf16.mxu0 %v2575_v15 }
 0x318   : > { %2352 = vmatpush3.bf16.msra.mxu1 %v2560_v16  ;;  %v2573_v16 = vld [vmem:[%s3420_s14 + $0x40] ss:$8 sps:$4 sm:$0xff]  }
 0x319   : > { %1880 = vmatpush1.bf16.msra.mxu0 %v2573_v16 }
 0x3b6   : > { %v1035_v18 = vpop.f32.mrb[4].mxu1 }
 0x3b7   : > { %v2429_v19 = vpop.f32.mrb[5].mxu1 }
 0x3b8   : > { %v1038_v63 = vpop.f32.mrb[6].mxu1  ;;  %v2576_v19 = vld [vmem:[%s3420_s14 + $0x50] ss:$8 sps:$4 sm:$0xff]  }
 0x3b9   : > { %v2430_v20 = vpop.f32.mrb[7].mxu1  ;;  %v2581_v63 = vld [vmem:[%s3420_s14 + $0x64] ss:$8 sps:$4 sm:$0xff]  }
 0x3ba   : > { %v2579_v20 = vld [vmem:[%s3420_s14 + $0x60] ss:$8 sps:$4 sm:$0xff]  }
 0x3bb   : > { %v1081_v21 = vpop.f32.mrb[16].mxu0 }
 0x3bc   : > { %v1082_v22 = vadd.f32 %v1081_v21, %v1035_v18  ;;  %v2437_v23 = vpop.f32.mrb[17].mxu0  ;;  %v2578_v18 = vld [vmem:[%s3420_s14 + $0x54] ss:$8 sps:$4 sm:$0xff]  }
 0x3bd   : > { %v1084_v24 = vpop.f32.mrb[18].mxu0  ;;  %1881 = vmatprep.subr.bf16.mxu0 %v2578_v18  ;;  %v2584_v21 = vld [vmem:[%s3420_s14 + $0x74] ss:$8 sps:$4 sm:$0xff]   ;;  %v2585_v23 = vld [vmem:[%s3422_s16 + $0x40] sm:$0xff]  }
 0x3be   : > { %v2438_v30 = vpop.f32.mrb[19].mxu0  ;;  %v1162_v32 = vpop.f32.mrb[8].mxu1  ;;  %1882 = vmatpush1.bf16.msra.mxu0 %v2576_v19  ;;  %v2586_v24 = vld [vmem:[%s3422_s16] sm:$0xff]   ;;  %2359 = vmatprep.subr.bf16.mxu1 %v2585_v23 }
 0x3bf   : > { %v1168_v33 = vadd.f32 %v1162_v32, %v1082_v22  ;;  %v2445_v34 = vpop.f32.mrb[9].mxu1  ;;  %1883 = vmatprep.subr.bf16.mxu0 %v2581_v63  ;;  %v2582_v22 = vld [vmem:[%s3420_s14 + $0x70] ss:$8 sps:$4 sm:$0xff]   ;;  %v2587_v30 = vld [vmem:[%s3422_s16 + $0x48] sm:$0xff]  }
 0x3c0   : > { %v1165_v0 = vpop.f32.mrb[10].mxu1  ;;  %v2588_v32 = vld [vmem:[%s3422_s16 + $0x8] sm:$0xff]   ;;  %v2590_v34 = vld [vmem:[%s3422_s16 + $0x10] sm:$0xff]  }
 0x3c1   : > { %v2446_v35 = vpop.f32.mrb[11].mxu1  ;;  %v2591_v0 = vld [vmem:[%s3422_s16 + $0x58] sm:$0xff]  }
 0x3c2   : > { %1884 = vmatpush1.bf16.msra.mxu0 %v2579_v20  ;;  %v2592_v35 = vld [vmem:[%s3422_s16 + $0x18] sm:$0xff]  }
 0x3c3   : > { %v1244_v36 = vpop.f32.mrb[20].mxu0  ;;  %1885 = vmatprep.subr.bf16.mxu0 %v2584_v21 }
 0x3c4   : > { %v1250_v37 = vadd.f32 %v1244_v36, %v1168_v33  ;;  %v2453_v38 = vpop.f32.mrb[21].mxu0  ;;  %v2589_v33 = vld [vmem:[%s3422_s16 + $0x50] sm:$0xff]   ;;  %v2593_v36 = vld [vmem:[%s3422_s16 + $0x60] sm:$0xff]  }
 0x3c5   : > { %v1247_v39 = vpop.f32.mrb[22].mxu0  ;;  %v2596_v38 = vld [vmem:[%s3422_s16 + $0x28] sm:$0xff]  }
 0x3c6   : > { %v1258_v40 = vadd.f32 %v2226_v62, %v1250_v37  ;;  %v2454_v43 = vpop.f32.mrb[23].mxu0  ;;  %v1365_v45 = vpop.f32.mrb[12].mxu1  ;;  %1886 = vmatpush1.bf16.msra.mxu0 %v2582_v22  ;;  %v2594_v62 = vld [vmem:[%s3422_s16 + $0x20] sm:$0xff]   ;;  %v2595_v37 = vld [vmem:[%s3422_s16 + $0x68] sm:$0xff]   ;;  %v2597_v39 = vld [vmem:[%s3422_s16 + $0x70] sm:$0xff]  }
 0x3c7   : > { %v2459_v49 = vpop.f32.mrb[13].mxu1  ;;  %v2246_v43 = vld [vmem:[%s3419_s13] ss:$0 sm:$0xff] }
 0x3c8   : > { %v1260_v50 = vmul.f32 1.442695, %v1258_v40  ;;  %v1368_v47 = vpop.f32.mrb[14].mxu1  ;;  %vm1259_vm0 = vcmp.gt.f32.partialorder %v1258_v40, 0.0 }
 0x3c9   : > { %v2460_v51 = vpop.f32.mrb[15].mxu1 }
 0x3ca   : > { %2633 = vpow2.f32 %v1260_v50 }
 0x3cb   : > { %v1408_v31 = vpop.f32.mrb[24].mxu0 }
 0x3cc   : > { %v1409_v52 = vadd.f32 %v1408_v31, %v1365_v45  ;;  %v2465_v53 = vpop.f32.mrb[25].mxu0 }
 0x3cd   : > { %v1411_v46 = vpop.f32.mrb[26].mxu0 }
 0x3ce   : > { %v2466_v54 = vpop.f32.mrb[27].mxu0  ;;  %v1481_v55 = vpop.f32.mrb[16].mxu1 }
 0x3cf   : > { %v1487_v27 = vadd.f32 %v1481_v55, %v1409_v52  ;;  %v2471_v56 = vpop.f32.mrb[17].mxu1 }
 0x3d0   : > { %v1484_v42 = vpop.f32.mrb[18].mxu1 }
 0x3d1   : > { %v2472_v44 = vpop.f32.mrb[19].mxu1 }
 0x3d3   : > { %v1555_v57 = vpop.f32.mrb[28].mxu0 }
 0x3d4   : > { %v2634_v59 = vpop.eup %2633  ;;  %v1561_v60 = vadd.f32 %v1555_v57, %v1487_v27  ;;  %v2477_v41 = vpop.f32.mrb[29].mxu0  ;;  %v2598_v57 = vld [vmem:[%s3422_s16 + $0x30] sm:$0xff]  }
 0x3d5   : > { %v1558_v48 = vpop.f32.mrb[30].mxu0  ;;  %v2227_v1 = vadd.f32 -1.0, %v2634_v59  ;;  %v2600_v59 = vld [vmem:[%s3422_s16 + $0x38] sm:$0xff]  }
 0x3d6   : > { %v1569_v61 = vadd.f32 %v2244_v29, %v1561_v60  ;;  %v2478_v28 = vpop.f32.mrb[31].mxu0  ;;  %v2599_v29 = vld [vmem:[%s3422_s16 + $0x78] sm:$0xff]   ;;  %v1779_v60 = vld [vmem:[%s3421_s15] sm:$0x3] }
 0x3d7   : > { %v3240_v3 = vsel %vm1259_vm0, %v1258_v40, %v2227_v1  ;;  %v1784_v41 = vrot.slane %v1779_v60, %v3037_v26  ;;  %v1788_v48 = vrot.slane %v1779_v60, %v3028_v17  ;;  %v2279_v26 = vld [vmem:[%s3423_s17] ss:$0 sm:$0xff] }
 0x3d8   : > { %v1571_v4 = vmul.f32 1.442695, %v1569_v61  ;;  %v1576_v58 = vpack.c.bf16 %v3240_v3, %v3240_v3  ;;  %vm1570_vm7 = vcmp.gt.f32.partialorder %v1569_v61, 0.0 }
 0x3da   : > { %2635 = vpow2.f32 %v1571_v4  ;;  %1744 = vmatprep.mubr.bf16.mxu1 %v1576_v58 }
 0x3e4   : > { %v2636_v2 = vpop.eup %2635 }
 0x3e5   : > { %v2245_v5 = vadd.f32 -1.0, %v2636_v2 }
 0x3e7   : > { %v3244_v12 = vsel %vm1570_vm7, %v1569_v61, %v2245_v5 }
 0x3e8   : > { %v1575_v6 = vpack.c.bf16 %v3244_v12, %v3244_v12 }
 0x3ea   : > { %1745 = vmatmul.mubr.bf16.vlgmr.msra.gmra.mrb[20].mxu1 %v1575_v6 }
 0x3eb   : > { %2360 = vmatpush3.bf16.msra.mxu1 %v2586_v24 }
 0x3ec   : > { %2361 = vmatprep.subr.bf16.mxu1 %v2587_v30 }
 0x3ef   : > { %2362 = vmatpush3.bf16.msra.mxu1 %v2588_v32 }
 0x3f0   : > { %2363 = vmatprep.subr.bf16.mxu1 %v2589_v33 }
 0x3f3   : > { %2364 = vmatpush3.bf16.msra.mxu1 %v2590_v34 }
 0x3f4   : > { %2365 = vmatprep.subr.bf16.mxu1 %v2591_v0 }
 0x3f7   : > { %2366 = vmatpush3.bf16.msra.mxu1 %v2592_v35 }
 0x3f8   : > { %2367 = vmatprep.subr.bf16.mxu1 %v2593_v36 }
 0x3fb   : > { %2368 = vmatpush3.bf16.msra.mxu1 %v2594_v62 }
 0x3fc   : > { %2369 = vmatprep.subr.bf16.mxu1 %v2595_v37 }
 0x3ff   : > { %2370 = vmatpush3.bf16.msra.mxu1 %v2596_v38 }
 0x400   : > { %2371 = vmatprep.subr.bf16.mxu1 %v2597_v39 }
 0x403   : > { %2372 = vmatpush3.bf16.msra.mxu1 %v2598_v57 }
 0x404   : > { %2373 = vmatprep.subr.bf16.mxu1 %v2599_v29 }
 0x407   : > { %2374 = vmatpush3.bf16.msra.mxu1 %v2600_v59 }
 0x4bd   : > { %v2353_v40 = vpop.f32.mrb[20].mxu1 }
 0x4be   : > { %v2354_v45 = vpop.f32.mrb[21].mxu1 }
 0x4bf   : > { %v2355_v49 = vadd.f32 %v2354_v45, %v2353_v40  ;;  %v2356_v50 = vpop.f32.mrb[22].mxu1 }
 0x4c0   : > { %v2357_v47 = vpop.f32.mrb[23].mxu1 }
 0x4c1   : > { %v1747_v51 = vadd.f32 %v2355_v49, %v2246_v43 }
 0x4c3   : > { %v1752_v31 = vsub.f32 0.0, %v1747_v51 }
 0x4c5   : > { %v1753_v52 = vmul.f32 1.442695, %v1752_v31 }
 0x4c7   : > { %2637 = vpow2.f32 %v1753_v52 }
 0x4d1   : > { %v2638_v53 = vpop.eup %2637 }
 0x4d2   : > { %v1755_v46 = vadd.f32 1.0, %v2638_v53 }
 0x4d4   : > { %2639 = vrcp.f32 %v1755_v46 }
 0x4de   : > { %v2640_v54 = vpop.eup %2639 }
 0x4df   : > { %v1759_v55 = vsub.f32 1.0, %v2640_v54  ;;  %v1758_v27 = vmul.f32 %v2640_v54, %v3244_v12 }
 0x4e1   : > { %v1760_v56 = vmul.f32 %v1759_v55, %v3240_v3 }
 0x4e3   : > { %v1761_v42 = vadd.f32 %v1760_v56, %v1758_v27 }
 0x4e5   : > { %v1762_v44 = vpack.c.bf16 %v1761_v42, %v1761_v42 }
 0x4e7   : > { %1904 = vmatmul.mubr.bf16.vlgmr.msra.gmra.mrb[32].mxu0 %v1762_v44 }
 0x5ba   : > { %v1905_v1 = vpop.f32.mrb[32].mxu0 }
 0x5bb   : > { %v1906_v61 = vadd.f32 %v1905_v1, %v1784_v41  ;;  %v1907_v28 = vpop.f32.mrb[33].mxu0 }
 0x5bc   : > { %v1908_v3 = vadd.f32 %v1907_v28, %v1788_v48  ;;  %v1909_v4 = vpop.f32.mrb[34].mxu0 }
 0x5bd   : > { %v1910_v58 = vpop.f32.mrb[35].mxu0  ;;  %v1912_v5 = vpack.c.bf16 %v1906_v61, %v1906_v61 }
 0x5be   : > { %v1913_v2 = vpack.c.bf16 %v1908_v3, %v1908_v3 }
 0x5c0   : > { %2081 = vmatprep.mubr.bf16.mxu1 %v1913_v2 }
 0x5c1   : > { %2082 = vmatmul.mubr.bf16.vlgmr.msra.gmra.mrb[24].mxu1 %v1912_v5 }
 0x694   : > { %v2375_v12 = vpop.f32.mrb[24].mxu1 }
 0x695   : > { %v2376_v17 = vpop.f32.mrb[25].mxu1 }
 0x696   : > { %v2377_v6 = vadd.f32 %v2376_v17, %v2375_v12  ;;  %v2378_v7 = vpop.f32.mrb[26].mxu1 }
 0x697   : > { %v2379_v8 = vpop.f32.mrb[27].mxu1 }
 0x698   : > { %v2084_v9 = vadd.f32 %v2377_v6, %v2279_v26 }
 0x69a   : > { %v2089_v11 = vadd.f32 %v2641_v10, %v2084_v9 }
 0x69c   : > { %2090 = vst.msk [vmem:[%s592_s19] sm:$0xff] %vm725_vm2, %v2089_v11 }
 0x69d   : > { %2655 = shalt.err (!%p2652_p3)
}
 0x69e   : > { %s2656_s22 = scalar_lea.hbm %s3363_s1, 128  ;;  %s2660_s19 = scalar_lea.hbm %s3424_s18, 256 }
 0x69f   : > { %p2657_p4 = scmp.ne.s32.totalorder %s3363_s1, %s2656_s22  ;;  %p2661_p9 = scmp.lt.u32.totalorder %s3363_s1, %s3424_s18 }
 0x6a0   : > { %p2662_p10 = scmp.lt.u32.totalorder %s2660_s19, %s2656_s22  ;;  %p2664_p12 = scmp.lt.u32.totalorder %s2656_s22, %s3363_s1 }
 0x6a1   : > { %p2658_p7 = pnand %p2657_p4, %p2850_p5 }
 0x6a2   : > { %p2663_p11 = por %p2662_p10, %p2661_p9 }
 0x6a3   : > { %p2659_p8 = pneg %p2658_p7 }
 0x6a4   : > { %p2665_p13 = por %p2664_p12, %p2663_p11 }
 0x6a6   : > { %p2666_p0 = pnand %p2665_p13, %p2659_p8 }
 0x6a8   : > { %2669 = shalt.err (!%p2666_p0)
}
 0x6a9   : > { %2479 = dma.vmem_to_hbm [thread:$0]  (%p2850_p5), %s3365_s24, 128, %s3363_s1, %s2092_s6  }
 0x6aa PF: > { %p2485_p1 = scmp.ge.s32.totalorder %s2704_s30, 2  ;;  %s2117_s5 = sand.u32 1, %s2692_s27  }
 0x6ab   : > { %s2118_s7 = scalar_lea.sflag [#allocation3], %s2117_s5 }
 0x6ac   : > { %p2482_p2 = pnand %p2485_p1, %p2854_p6 }
 0x6ae   : > { %2687 = dma.done.wait (!%p2482_p2), %s2118_s7, 128  }
 0x6af   : > { %2689 = vsyncadd (!%p2482_p2), %s2118_s7, 4294967168  ;;  %s3461_s30 = sld [smem:[#allocation6_spill]]  ;;  %s3462_s0 = sld [smem:[#allocation5_spill]] }
 0x6b0   : > { %s3463_s29 = sld [smem:[#allocation7_spill]]  ;;  %s3464_s27 = smov %s2696_s28 }
 0x6b5   : > { %p28_p3 = scmp.ge.s32.totalorder %s3461_s30, 4   ;;  %s3465_s28 = smov %s3462_s0 }
 0x6b7   :  { %30 = sbr.rel (!%p28_p3) target bundleno = 10 (0xa), region = 133 }
 0x6be   :  { %2123 = vsyncpa [#allocation3], 1 }
 0x6bf   :  { %2125 = vsyncpa [#allocation3 + $0x1], 1 }

</bundles_post_ra>
